<compile_context>
chip_gen: v7x
topology: tpu7x:2x2x1
jax: 0.10.0
libtpu: 0.0.40
codegen_flags: <defaults>
</compile_context>

<pallas_src>
import jax
import jax.numpy as jnp
import numpy as np
from jax.experimental import pallas as pl
from jax.experimental.pallas import tpu as pltpu

# ---- Small, deterministic hyperparameters consistent with FVAEDecoder ----
B = 2
LATENT = 8          # latent_channels
HIDDEN = 32         # hidden_channels
OUT = 16            # out_channels
KSIZE = 3           # kernel_size (odd, dilation_rate = 1 -> padding = 1)
NLAYERS = 2         # n_layers
GIN = 16            # gin_channels
STRIDE = 4          # strides = [4]
T_LAT = 8           # latent-frame length
T_OUT = T_LAT * STRIDE
BT = B * T_OUT      # batch fused into the matmul M dimension
# p_dropout = 0 -> nn.Dropout is the identity (eval semantics)
# torch weight_norm at init equals the underlying conv weight -> folded into weights


def fvae_decoder_kernel(x_ref, m_ref, g_ref,
                        pre_w_ref, pre_b_ref,
                        cond_w_ref,
                        in_w_ref, in_b_ref,
                        res_w_ref, res_b_ref,
                        out_w_ref, out_b_ref,
                        o_ref):
    H = HIDDEN

    # Hoisted broadcasts: sequence mask at full (BT, H) width and the
    # per-sequence boundary masks that re-zero the rows wrapped across batch
    # boundaries by the circular rolls below.
    mask_h = jnp.broadcast_to(m_ref[...], (BT, H))
    t_in_seq = jax.lax.broadcasted_iota(jnp.int32, (BT, H), 0) % T_OUT
    not_first = (t_in_seq != 0).astype(jnp.float32)           # kills h[t-1] at t == 0
    not_last = (t_in_seq != T_OUT - 1).astype(jnp.float32)    # kills h[t+1] at t == T-1

    g = g_ref[...]                                            # (BT, GIN)

    # ---- pre_net: ConvTranspose1d(kernel=stride) as ONE dense matmul ----
    # (phase structure lives in the block-structured x operand; see wrapper)
    h = jnp.dot(x_ref[...], pre_w_ref[...], preferred_element_type=jnp.float32)
    h = (h + pre_b_ref[...]) * mask_h                         # x = pre_net(x) * x_mask

    # ---- WN: gated 3-tap conv stack with conditioning ----
    out_skip = None
    for i in range(NLAYERS):   # tiny static depth; use lax.fori_loop for deep stacks
        # Shifted taps via XLU rolls (sublane rotate); boundary rows re-zeroed so
        # the fused-batch slab keeps per-sequence zero-padding semantics.
        h_prev = pltpu.roll(h, 1, 0) * not_first              # h[t-1]
        h_next = pltpu.roll(h, BT - 1, 0) * not_last          # h[t+1] (roll by -1)
        # in_layers[i] + cond_layer block i (dropout is identity, p_dropout = 0).
        # in_b_ref already contains in_layer bias + cond_layer bias (pack-time fold).
        x_in = (jnp.dot(h_prev, in_w_ref[i, 0], preferred_element_type=jnp.float32)
                + jnp.dot(h, in_w_ref[i, 1], preferred_element_type=jnp.float32)
                + jnp.dot(h_next, in_w_ref[i, 2], preferred_element_type=jnp.float32)
                + jnp.dot(g, cond_w_ref[i], preferred_element_type=jnp.float32)
                + in_b_ref[i])
        # fused_add_tanh_sigmoid_multiply
        acts = jnp.tanh(x_in[:, :H]) * jax.nn.sigmoid(x_in[:, H:])
        # res_skip_layers[i] (last layer's residual half is zero-padded in packing)
        rs = jnp.dot(acts, res_w_ref[i], preferred_element_type=jnp.float32) + res_b_ref[i]
        if i < NLAYERS - 1:                                   # reference never uses x after
            h = (h + rs[:, :H]) * mask_h                      # the final layer -> skip it
        skip = rs[:, H:]
        out_skip = skip if out_skip is None else out_skip + skip

    out_skip = out_skip * mask_h                              # WN output * x_mask

    # ---- out_proj: 1x1 conv; single (BT, OUT) store ----
    o_ref[...] = (jnp.dot(out_skip, out_w_ref[...], preferred_element_type=jnp.float32)
                  + out_b_ref[...]).astype(o_ref.dtype)


# -------------------- parameters (PyTorch layouts, deterministic) --------------------
def init_params(key):
    ks = jax.random.split(key, 10)

    def rn(k, shape, scale=0.1):
        return scale * jax.random.normal(k, shape, jnp.float32)

    P = {}
    P['pre_w'] = rn(ks[0], (LATENT, HIDDEN, STRIDE))          # ConvTranspose1d (in, out, k)
    P['pre_b'] = rn(ks[1], (HIDDEN,))
    P['cond_w'] = rn(ks[2], (2 * HIDDEN * NLAYERS, GIN, 1))   # Conv1d (out, in, 1)
    P['cond_b'] = rn(ks[3], (2 * HIDDEN * NLAYERS,))
    P['in_w'] = [rn(jax.random.fold_in(ks[4], i), (2 * HIDDEN, HIDDEN, KSIZE))
                 for i in range(NLAYERS)]
    P['in_b'] = [rn(jax.random.fold_in(ks[5], i), (2 * HIDDEN,)) for i in range(NLAYERS)]
    P['res_w'], P['res_b'] = [], []
    for i in range(NLAYERS):
        rc = 2 * HIDDEN if i < NLAYERS - 1 else HIDDEN
        P['res_w'].append(rn(jax.random.fold_in(ks[6], i), (rc, HIDDEN, 1)))
        P['res_b'].append(rn(jax.random.fold_in(ks[7], i), (rc,)))
    P['out_w'] = rn(ks[8], (OUT, HIDDEN, 1))
    P['out_b'] = rn(ks[9], (OUT,))
    return P


def pack_kernel_params(P):
    """Rearrange PyTorch-layout weights into kernel (batch-fused matmul) layouts."""
    H, K, N, S = HIDDEN, KSIZE, NLAYERS, STRIDE
    # pre_net: rows ordered (phase, latent) to match the block-structured x_exp operand.
    pre_w = jnp.transpose(P['pre_w'], (2, 0, 1)).reshape(S * LATENT, H)   # (S*L, H)
    pre_b = P['pre_b'].reshape(1, H)
    # cond layer packed LAYER-MAJOR: (N, GIN, 2H) -> per-layer ref index, no lane slicing.
    cond_w = jnp.transpose(P['cond_w'][:, :, 0].reshape(N, 2 * H, GIN), (0, 2, 1))
    cond_b = P['cond_b'].reshape(N, 2 * H)
    # in_layers[i]: (N, K, H, 2H); tap k multiplies h[t + k - 1].
    in_w = jnp.stack([jnp.transpose(P['in_w'][i], (2, 1, 0)) for i in range(N)])
    # cond bias folded into in bias -> one fewer vector add per layer in the kernel.
    in_b = jnp.stack([(P['in_b'][i] + cond_b[i]).reshape(1, 2 * H) for i in range(N)])
    # res_skip_layers[i]: (N, H, 2H); last layer's residual half zero-padded
    # (the kernel never reads that half -- it only keeps the packing uniform).
    res_w_l, res_b_l = [], []
    for i in range(N):
        w = jnp.transpose(P['res_w'][i][:, :, 0], (1, 0))                 # (H, rc)
        b = P['res_b'][i]
        if i == N - 1:
            w = jnp.concatenate([jnp.zeros((H, H), jnp.float32), w], axis=1)
            b = jnp.concatenate([jnp.zeros((H,), jnp.float32), b])
        res_w_l.append(w)
        res_b_l.append(b.reshape(1, 2 * H))
    res_w = jnp.stack(res_w_l)                                            # (N, H, 2H)
    res_b = jnp.stack(res_b_l)                                            # (N, 1, 2H)
    out_w = jnp.transpose(P['out_w'][:, :, 0], (1, 0))                    # (H, OUT)
    out_b = P['out_b'].reshape(1, OUT)
    # Note: on v6e/v7x the weight tensors could be stored as bf16 (f32 accumulation
    # via preferred_element_type) to halve weight HBM traffic at production sizes.
    return (pre_w, pre_b, cond_w, in_w, in_b, res_w, res_b, out_w, out_b)


# -------------------- wrapper --------------------
@jax.jit
def fvae_decoder_pallas(x, x_mask, g, kp):
    """x: (B, LATENT, T_LAT), x_mask: (B, 1, T_OUT), g: (B, GIN, T_OUT)  (PyTorch NCL)."""
    bsz = x.shape[0]
    # Layout glue only: NCL -> batch-fused (B*T, C) slabs (time on sublanes,
    # channels on lanes, batch folded into the matmul M dimension).
    x_lat = jnp.transpose(x, (0, 2, 1)).reshape(bsz * T_LAT, LATENT)      # (B*T_LAT, L)
    # ConvTranspose1d(kernel=stride) phase selection folded into a block-structured
    # operand: row (r*S + s) carries latent frame r in lane-block s, zeros elsewhere,
    # so pre_net becomes a single dense matmul inside the kernel.
    eye = jnp.eye(STRIDE, dtype=x_lat.dtype)
    x_exp = jnp.einsum('rl,sp->rspl', x_lat, eye).reshape(bsz * T_OUT, STRIDE * LATENT)
    m_bt = jnp.transpose(x_mask, (0, 2, 1)).reshape(bsz * T_OUT, 1)       # (B*T, 1)
    g_bt = jnp.transpose(g, (0, 2, 1)).reshape(bsz * T_OUT, GIN)          # (B*T, GIN)

    # Gridless call: single invocation, all operands whole-array VMEM residents.
    out = pl.pallas_call(
        fvae_decoder_kernel,
        out_shape=jax.ShapeDtypeStruct((bsz * T_OUT, OUT), jnp.float32),
    )(x_exp, m_bt, g_bt, *kp)
    return jnp.transpose(out.reshape(bsz, T_OUT, OUT), (0, 2, 1))         # (B, OUT, T)


# -------------------- pure-JAX reference (PyTorch semantics, NCL) --------------------
def _conv1d_ref(x, w, b, pad=0):
    y = jax.lax.conv_general_dilated(x, w, window_strides=(1,), padding=[(pad, pad)],
                                     dimension_numbers=('NCH', 'OIH', 'NCH'))
    return y + b[None, :, None]


def reference_forward(x, x_mask, g, P):
    bsz = x.shape[0]
    # ConvTranspose1d with kernel == stride
    e = jnp.einsum('bct,cok->btko', x, P['pre_w'])                 # (B, T_LAT, S, H)
    h = e.reshape(bsz, T_OUT, HIDDEN).transpose(0, 2, 1) + P['pre_b'][None, :, None]
    h = h * x_mask
    gcond = _conv1d_ref(g, P['cond_w'], P['cond_b'])
    output = jnp.zeros_like(h)
    xx = h
    for i in range(NLAYERS):
        x_in = _conv1d_ref(xx, P['in_w'][i], P['in_b'][i], pad=(KSIZE - 1) // 2)
        in_act = x_in + gcond[:, i * 2 * HIDDEN:(i + 1) * 2 * HIDDEN]
        acts = jnp.tanh(in_act[:, :HIDDEN]) * jax.nn.sigmoid(in_act[:, HIDDEN:])
        rs = _conv1d_ref(acts, P['res_w'][i], P['res_b'][i])
        if i < NLAYERS - 1:
            xx = (xx + rs[:, :HIDDEN]) * x_mask
            output = output + rs[:, HIDDEN:]
        else:
            output = output + rs
    output = output * x_mask
    return _conv1d_ref(output, P['out_w'], P['out_b'])


if __name__ == "__main__":
    key = jax.random.PRNGKey(0)
    kx, kg, kp_key = jax.random.split(key, 3)
    x = jax.random.normal(kx, (B, LATENT, T_LAT), jnp.float32)
    lengths = jnp.array([T_OUT, 24], jnp.int32)
    t_idx = jnp.arange(T_OUT)[None, :]
    x_mask = (t_idx < lengths[:, None]).astype(jnp.float32)[:, None, :]   # (B, 1, T_OUT)
    g = jax.random.normal(kg, (B, GIN, T_OUT), jnp.float32)

    P = init_params(kp_key)
    kp = pack_kernel_params(P)

    out = fvae_decoder_pallas(x, x_mask, g, kp)
    out = jax.block_until_ready(out)
    assert out.shape == (B, OUT, T_OUT)

    ref = reference_forward(x, x_mask, g, P)
    np.testing.assert_allclose(np.asarray(out), np.asarray(ref), atol=1e-4, rtol=1e-4)
    print("KERNEL_OK")
</pallas_src>

<mosaic_0001>
module attributes {stable_mosaic.version = 11 : i64} {
  func.func @fvae_decoder_kernel(%arg0: memref<64x32xf32, #tpu.memory_space<vmem>>, %arg1: memref<64x1xf32, #tpu.memory_space<vmem>>, %arg2: memref<64x16xf32, #tpu.memory_space<vmem>>, %arg3: memref<32x32xf32, #tpu.memory_space<vmem>>, %arg4: memref<1x32xf32, #tpu.memory_space<vmem>>, %arg5: memref<2x16x64xf32, #tpu.memory_space<vmem>>, %arg6: memref<2x3x32x64xf32, #tpu.memory_space<vmem>>, %arg7: memref<2x1x64xf32, #tpu.memory_space<vmem>>, %arg8: memref<2x32x64xf32, #tpu.memory_space<vmem>>, %arg9: memref<2x1x64xf32, #tpu.memory_space<vmem>>, %arg10: memref<32x16xf32, #tpu.memory_space<vmem>>, %arg11: memref<1x16xf32, #tpu.memory_space<vmem>>, %arg12: memref<64x16xf32, #tpu.memory_space<vmem>>) attributes {dimension_semantics = [], scalar_prefetch = 0 : i64, scratch_operands = 0 : i64, tpu.core_type = #tpu.core_type<tc>} {
    %c0 = arith.constant 0 : index
    %c0_0 = arith.constant 0 : index
    %0 = vector.load %arg1[%c0, %c0_0] : memref<64x1xf32, #tpu.memory_space<vmem>>, vector<64x1xf32>
    %1 = vector.shape_cast %0 : vector<64x1xf32> to vector<64x1xf32>
    %2 = vector.broadcast %1 : vector<64x1xf32> to vector<64x32xf32>
    %3 = tpu.iota {dimensions = array<i32: 0>} : vector<64x32xi32>
    %c32_i32 = arith.constant 32 : i32
    %c0_i32 = arith.constant 0 : i32
    %4 = arith.cmpi eq, %c32_i32, %c0_i32 : i32
    %c1_i32 = arith.constant 1 : i32
    %5 = arith.select %4, %c1_i32, %c32_i32 : i32
    %6 = vector.broadcast %5 : i32 to vector<64x32xi32>
    %7 = arith.remsi %3, %6 : vector<64x32xi32>
    %c0_i32_1 = arith.constant 0 : i32
    %8 = vector.broadcast %c0_i32_1 : i32 to vector<64x32xi32>
    %9 = arith.cmpi ne, %7, %8 : vector<64x32xi32>
    %c0_i32_2 = arith.constant 0 : i32
    %10 = vector.broadcast %c0_i32_2 : i32 to vector<64x32xi32>
    %11 = arith.cmpi slt, %7, %10 : vector<64x32xi32>
    %c0_i32_3 = arith.constant 0 : i32
    %12 = arith.cmpi slt, %5, %c0_i32_3 : i32
    %13 = vector.broadcast %12 : i1 to vector<64x32xi1>
    %14 = vector.broadcast %13 : vector<64x32xi1> to vector<64x32xi1>
    %15 = arith.xori %11, %14 : vector<64x32xi1>
    %16 = arith.andi %15, %9 : vector<64x32xi1>
    %17 = vector.broadcast %5 : i32 to vector<64x32xi32>
    %18 = arith.addi %7, %17 : vector<64x32xi32>
    %19 = arith.select %16, %18, %7 : vector<64x32xi1>, vector<64x32xi32>
    %c0_i32_4 = arith.constant 0 : i32
    %20 = vector.broadcast %c0_i32_4 : i32 to vector<64x32xi32>
    %21 = arith.cmpi ne, %19, %20 : vector<64x32xi32>
    %22 = arith.extui %21 : vector<64x32xi1> to vector<64x32xi32>
    %23 = arith.sitofp %22 : vector<64x32xi32> to vector<64x32xf32>
    %c31_i32 = arith.constant 31 : i32
    %24 = vector.broadcast %c31_i32 : i32 to vector<64x32xi32>
    %25 = arith.cmpi ne, %19, %24 : vector<64x32xi32>
    %26 = arith.extui %25 : vector<64x32xi1> to vector<64x32xi32>
    %27 = arith.sitofp %26 : vector<64x32xi32> to vector<64x32xf32>
    %c0_5 = arith.constant 0 : index
    %c0_6 = arith.constant 0 : index
    %28 = vector.load %arg2[%c0_5, %c0_6] : memref<64x16xf32, #tpu.memory_space<vmem>>, vector<64x16xf32>
    %c0_7 = arith.constant 0 : index
    %c0_8 = arith.constant 0 : index
    %29 = vector.load %arg0[%c0_7, %c0_8] : memref<64x32xf32, #tpu.memory_space<vmem>>, vector<64x32xf32>
    %c0_9 = arith.constant 0 : index
    %c0_10 = arith.constant 0 : index
    %30 = vector.load %arg3[%c0_9, %c0_10] : memref<32x32xf32, #tpu.memory_space<vmem>>, vector<32x32xf32>
    %cst = arith.constant dense<0.000000e+00> : vector<64x32xf32>
    %31 = tpu.matmul %29, %30, %cst {dimension_numbers = #tpu.dot_dimension_numbers<[1], [0], [0], [1], [0, 0, 1, 1], [], []>} : vector<64x32xf32>, vector<32x32xf32>, vector<64x32xf32> -> vector<64x32xf32>
    %c0_11 = arith.constant 0 : index
    %c0_12 = arith.constant 0 : index
    %32 = vector.load %arg4[%c0_11, %c0_12] : memref<1x32xf32, #tpu.memory_space<vmem>>, vector<1x32xf32>
    %33 = vector.broadcast %32 : vector<1x32xf32> to vector<64x32xf32>
    %34 = arith.addf %31, %33 : vector<64x32xf32>
    %35 = arith.mulf %34, %2 : vector<64x32xf32>
    %c1_i32_13 = arith.constant 1 : i32
    %36 = tpu.dynamic_rotate %35 by %c1_i32_13 dim 0 : vector<64x32xf32>, i32 -> vector<64x32xf32>
    %37 = arith.mulf %36, %23 : vector<64x32xf32>
    %c63_i32 = arith.constant 63 : i32
    %38 = tpu.dynamic_rotate %35 by %c63_i32 dim 0 : vector<64x32xf32>, i32 -> vector<64x32xf32>
    %39 = arith.mulf %38, %27 : vector<64x32xf32>
    %c0_14 = arith.constant 0 : index
    %c0_15 = arith.constant 0 : index
    %c0_16 = arith.constant 0 : index
    %c0_17 = arith.constant 0 : index
    %40 = vector.load %arg6[%c0_14, %c0_15, %c0_16, %c0_17] : memref<2x3x32x64xf32, #tpu.memory_space<vmem>>, vector<1x1x32x64xf32>
    %41 = vector.shape_cast %40 : vector<1x1x32x64xf32> to vector<32x64xf32>
    %cst_18 = arith.constant dense<0.000000e+00> : vector<64x64xf32>
    %42 = tpu.matmul %37, %41, %cst_18 {dimension_numbers = #tpu.dot_dimension_numbers<[1], [0], [0], [1], [0, 0, 1, 1], [], []>} : vector<64x32xf32>, vector<32x64xf32>, vector<64x64xf32> -> vector<64x64xf32>
    %c0_19 = arith.constant 0 : index
    %c1 = arith.constant 1 : index
    %c0_20 = arith.constant 0 : index
    %c0_21 = arith.constant 0 : index
    %43 = vector.load %arg6[%c0_19, %c1, %c0_20, %c0_21] : memref<2x3x32x64xf32, #tpu.memory_space<vmem>>, vector<1x1x32x64xf32>
    %44 = vector.shape_cast %43 : vector<1x1x32x64xf32> to vector<32x64xf32>
    %cst_22 = arith.constant dense<0.000000e+00> : vector<64x64xf32>
    %45 = tpu.matmul %35, %44, %cst_22 {dimension_numbers = #tpu.dot_dimension_numbers<[1], [0], [0], [1], [0, 0, 1, 1], [], []>} : vector<64x32xf32>, vector<32x64xf32>, vector<64x64xf32> -> vector<64x64xf32>
    %46 = arith.addf %42, %45 : vector<64x64xf32>
    %c0_23 = arith.constant 0 : index
    %c2 = arith.constant 2 : index
    %c0_24 = arith.constant 0 : index
    %c0_25 = arith.constant 0 : index
    %47 = vector.load %arg6[%c0_23, %c2, %c0_24, %c0_25] : memref<2x3x32x64xf32, #tpu.memory_space<vmem>>, vector<1x1x32x64xf32>
    %48 = vector.shape_cast %47 : vector<1x1x32x64xf32> to vector<32x64xf32>
    %cst_26 = arith.constant dense<0.000000e+00> : vector<64x64xf32>
    %49 = tpu.matmul %39, %48, %cst_26 {dimension_numbers = #tpu.dot_dimension_numbers<[1], [0], [0], [1], [0, 0, 1, 1], [], []>} : vector<64x32xf32>, vector<32x64xf32>, vector<64x64xf32> -> vector<64x64xf32>
    %50 = arith.addf %46, %49 : vector<64x64xf32>
    %c0_27 = arith.constant 0 : index
    %c0_28 = arith.constant 0 : index
    %c0_29 = arith.constant 0 : index
    %51 = vector.load %arg5[%c0_27, %c0_28, %c0_29] : memref<2x16x64xf32, #tpu.memory_space<vmem>>, vector<1x16x64xf32>
    %52 = vector.shape_cast %51 : vector<1x16x64xf32> to vector<16x64xf32>
    %cst_30 = arith.constant dense<0.000000e+00> : vector<64x64xf32>
    %53 = tpu.matmul %28, %52, %cst_30 {dimension_numbers = #tpu.dot_dimension_numbers<[1], [0], [0], [1], [0, 0, 1, 1], [], []>} : vector<64x16xf32>, vector<16x64xf32>, vector<64x64xf32> -> vector<64x64xf32>
    %54 = arith.addf %50, %53 : vector<64x64xf32>
    %c0_31 = arith.constant 0 : index
    %c0_32 = arith.constant 0 : index
    %c0_33 = arith.constant 0 : index
    %55 = vector.load %arg7[%c0_31, %c0_32, %c0_33] : memref<2x1x64xf32, #tpu.memory_space<vmem>>, vector<1x1x64xf32>
    %56 = vector.shape_cast %55 : vector<1x1x64xf32> to vector<1x64xf32>
    %57 = vector.broadcast %56 : vector<1x64xf32> to vector<64x64xf32>
    %58 = arith.addf %54, %57 : vector<64x64xf32>
    %59 = vector.extract_strided_slice %58 {offsets = [0, 0], sizes = [64, 32], strides = [1, 1]} : vector<64x64xf32> to vector<64x32xf32>
    %60 = math.tanh %59 : vector<64x32xf32>
    %61 = vector.extract_strided_slice %58 {offsets = [0, 32], sizes = [64, 32], strides = [1, 1]} : vector<64x64xf32> to vector<64x32xf32>
    %62 = arith.negf %61 : vector<64x32xf32>
    %63 = math.exp %62 : vector<64x32xf32>
    %cst_34 = arith.constant 1.000000e+00 : f32
    %64 = vector.broadcast %cst_34 : f32 to vector<64x32xf32>
    %65 = arith.addf %64, %63 : vector<64x32xf32>
    %66 = arith.divf %64, %65 : vector<64x32xf32>
    %67 = arith.mulf %60, %66 : vector<64x32xf32>
    %c0_35 = arith.constant 0 : index
    %c0_36 = arith.constant 0 : index
    %c0_37 = arith.constant 0 : index
    %68 = vector.load %arg8[%c0_35, %c0_36, %c0_37] : memref<2x32x64xf32, #tpu.memory_space<vmem>>, vector<1x32x64xf32>
    %69 = vector.shape_cast %68 : vector<1x32x64xf32> to vector<32x64xf32>
    %cst_38 = arith.constant dense<0.000000e+00> : vector<64x64xf32>
    %70 = tpu.matmul %67, %69, %cst_38 {dimension_numbers = #tpu.dot_dimension_numbers<[1], [0], [0], [1], [0, 0, 1, 1], [], []>} : vector<64x32xf32>, vector<32x64xf32>, vector<64x64xf32> -> vector<64x64xf32>
    %c0_39 = arith.constant 0 : index
    %c0_40 = arith.constant 0 : index
    %c0_41 = arith.constant 0 : index
    %71 = vector.load %arg9[%c0_39, %c0_40, %c0_41] : memref<2x1x64xf32, #tpu.memory_space<vmem>>, vector<1x1x64xf32>
    %72 = vector.shape_cast %71 : vector<1x1x64xf32> to vector<1x64xf32>
    %73 = vector.broadcast %72 : vector<1x64xf32> to vector<64x64xf32>
    %74 = arith.addf %70, %73 : vector<64x64xf32>
    %75 = vector.extract_strided_slice %74 {offsets = [0, 0], sizes = [64, 32], strides = [1, 1]} : vector<64x64xf32> to vector<64x32xf32>
    %76 = arith.addf %35, %75 : vector<64x32xf32>
    %77 = arith.mulf %76, %2 : vector<64x32xf32>
    %78 = vector.extract_strided_slice %74 {offsets = [0, 32], sizes = [64, 32], strides = [1, 1]} : vector<64x64xf32> to vector<64x32xf32>
    %c1_i32_42 = arith.constant 1 : i32
    %79 = tpu.dynamic_rotate %77 by %c1_i32_42 dim 0 : vector<64x32xf32>, i32 -> vector<64x32xf32>
    %80 = arith.mulf %79, %23 : vector<64x32xf32>
    %c63_i32_43 = arith.constant 63 : i32
    %81 = tpu.dynamic_rotate %77 by %c63_i32_43 dim 0 : vector<64x32xf32>, i32 -> vector<64x32xf32>
    %82 = arith.mulf %81, %27 : vector<64x32xf32>
    %c1_44 = arith.constant 1 : index
    %c0_45 = arith.constant 0 : index
    %c0_46 = arith.constant 0 : index
    %c0_47 = arith.constant 0 : index
    %83 = vector.load %arg6[%c1_44, %c0_45, %c0_46, %c0_47] : memref<2x3x32x64xf32, #tpu.memory_space<vmem>>, vector<1x1x32x64xf32>
    %84 = vector.shape_cast %83 : vector<1x1x32x64xf32> to vector<32x64xf32>
    %cst_48 = arith.constant dense<0.000000e+00> : vector<64x64xf32>
    %85 = tpu.matmul %80, %84, %cst_48 {dimension_numbers = #tpu.dot_dimension_numbers<[1], [0], [0], [1], [0, 0, 1, 1], [], []>} : vector<64x32xf32>, vector<32x64xf32>, vector<64x64xf32> -> vector<64x64xf32>
    %c1_49 = arith.constant 1 : index
    %c1_50 = arith.constant 1 : index
    %c0_51 = arith.constant 0 : index
    %c0_52 = arith.constant 0 : index
    %86 = vector.load %arg6[%c1_49, %c1_50, %c0_51, %c0_52] : memref<2x3x32x64xf32, #tpu.memory_space<vmem>>, vector<1x1x32x64xf32>
    %87 = vector.shape_cast %86 : vector<1x1x32x64xf32> to vector<32x64xf32>
    %cst_53 = arith.constant dense<0.000000e+00> : vector<64x64xf32>
    %88 = tpu.matmul %77, %87, %cst_53 {dimension_numbers = #tpu.dot_dimension_numbers<[1], [0], [0], [1], [0, 0, 1, 1], [], []>} : vector<64x32xf32>, vector<32x64xf32>, vector<64x64xf32> -> vector<64x64xf32>
    %89 = arith.addf %85, %88 : vector<64x64xf32>
    %c1_54 = arith.constant 1 : index
    %c2_55 = arith.constant 2 : index
    %c0_56 = arith.constant 0 : index
    %c0_57 = arith.constant 0 : index
    %90 = vector.load %arg6[%c1_54, %c2_55, %c0_56, %c0_57] : memref<2x3x32x64xf32, #tpu.memory_space<vmem>>, vector<1x1x32x64xf32>
    %91 = vector.shape_cast %90 : vector<1x1x32x64xf32> to vector<32x64xf32>
    %cst_58 = arith.constant dense<0.000000e+00> : vector<64x64xf32>
    %92 = tpu.matmul %82, %91, %cst_58 {dimension_numbers = #tpu.dot_dimension_numbers<[1], [0], [0], [1], [0, 0, 1, 1], [], []>} : vector<64x32xf32>, vector<32x64xf32>, vector<64x64xf32> -> vector<64x64xf32>
    %93 = arith.addf %89, %92 : vector<64x64xf32>
    %c1_59 = arith.constant 1 : index
    %c0_60 = arith.constant 0 : index
    %c0_61 = arith.constant 0 : index
    %94 = vector.load %arg5[%c1_59, %c0_60, %c0_61] : memref<2x16x64xf32, #tpu.memory_space<vmem>>, vector<1x16x64xf32>
    %95 = vector.shape_cast %94 : vector<1x16x64xf32> to vector<16x64xf32>
    %cst_62 = arith.constant dense<0.000000e+00> : vector<64x64xf32>
    %96 = tpu.matmul %28, %95, %cst_62 {dimension_numbers = #tpu.dot_dimension_numbers<[1], [0], [0], [1], [0, 0, 1, 1], [], []>} : vector<64x16xf32>, vector<16x64xf32>, vector<64x64xf32> -> vector<64x64xf32>
    %97 = arith.addf %93, %96 : vector<64x64xf32>
    %c1_63 = arith.constant 1 : index
    %c0_64 = arith.constant 0 : index
    %c0_65 = arith.constant 0 : index
    %98 = vector.load %arg7[%c1_63, %c0_64, %c0_65] : memref<2x1x64xf32, #tpu.memory_space<vmem>>, vector<1x1x64xf32>
    %99 = vector.shape_cast %98 : vector<1x1x64xf32> to vector<1x64xf32>
    %100 = vector.broadcast %99 : vector<1x64xf32> to vector<64x64xf32>
    %101 = arith.addf %97, %100 : vector<64x64xf32>
    %102 = vector.extract_strided_slice %101 {offsets = [0, 0], sizes = [64, 32], strides = [1, 1]} : vector<64x64xf32> to vector<64x32xf32>
    %103 = math.tanh %102 : vector<64x32xf32>
    %104 = vector.extract_strided_slice %101 {offsets = [0, 32], sizes = [64, 32], strides = [1, 1]} : vector<64x64xf32> to vector<64x32xf32>
    %105 = arith.negf %104 : vector<64x32xf32>
    %106 = math.exp %105 : vector<64x32xf32>
    %cst_66 = arith.constant 1.000000e+00 : f32
    %107 = vector.broadcast %cst_66 : f32 to vector<64x32xf32>
    %108 = arith.addf %107, %106 : vector<64x32xf32>
    %109 = arith.divf %107, %108 : vector<64x32xf32>
    %110 = arith.mulf %103, %109 : vector<64x32xf32>
    %c1_67 = arith.constant 1 : index
    %c0_68 = arith.constant 0 : index
    %c0_69 = arith.constant 0 : index
    %111 = vector.load %arg8[%c1_67, %c0_68, %c0_69] : memref<2x32x64xf32, #tpu.memory_space<vmem>>, vector<1x32x64xf32>
    %112 = vector.shape_cast %111 : vector<1x32x64xf32> to vector<32x64xf32>
    %cst_70 = arith.constant dense<0.000000e+00> : vector<64x64xf32>
    %113 = tpu.matmul %110, %112, %cst_70 {dimension_numbers = #tpu.dot_dimension_numbers<[1], [0], [0], [1], [0, 0, 1, 1], [], []>} : vector<64x32xf32>, vector<32x64xf32>, vector<64x64xf32> -> vector<64x64xf32>
    %c1_71 = arith.constant 1 : index
    %c0_72 = arith.constant 0 : index
    %c0_73 = arith.constant 0 : index
    %114 = vector.load %arg9[%c1_71, %c0_72, %c0_73] : memref<2x1x64xf32, #tpu.memory_space<vmem>>, vector<1x1x64xf32>
    %115 = vector.shape_cast %114 : vector<1x1x64xf32> to vector<1x64xf32>
    %116 = vector.broadcast %115 : vector<1x64xf32> to vector<64x64xf32>
    %117 = arith.addf %113, %116 : vector<64x64xf32>
    %118 = vector.extract_strided_slice %117 {offsets = [0, 32], sizes = [64, 32], strides = [1, 1]} : vector<64x64xf32> to vector<64x32xf32>
    %119 = arith.addf %78, %118 : vector<64x32xf32>
    %120 = arith.mulf %119, %2 : vector<64x32xf32>
    %c0_74 = arith.constant 0 : index
    %c0_75 = arith.constant 0 : index
    %121 = vector.load %arg10[%c0_74, %c0_75] : memref<32x16xf32, #tpu.memory_space<vmem>>, vector<32x16xf32>
    %cst_76 = arith.constant dense<0.000000e+00> : vector<64x16xf32>
    %122 = tpu.matmul %120, %121, %cst_76 {dimension_numbers = #tpu.dot_dimension_numbers<[1], [0], [0], [1], [0, 0, 1, 1], [], []>} : vector<64x32xf32>, vector<32x16xf32>, vector<64x16xf32> -> vector<64x16xf32>
    %c0_77 = arith.constant 0 : index
    %c0_78 = arith.constant 0 : index
    %123 = vector.load %arg11[%c0_77, %c0_78] : memref<1x16xf32, #tpu.memory_space<vmem>>, vector<1x16xf32>
    %124 = vector.broadcast %123 : vector<1x16xf32> to vector<64x16xf32>
    %125 = arith.addf %122, %124 : vector<64x16xf32>
    %c0_79 = arith.constant 0 : index
    %c0_80 = arith.constant 0 : index
    %126 = vector.load %arg12[%c0_79, %c0_80] : memref<64x16xf32, #tpu.memory_space<vmem>>, vector<64x16xf32>
    tpu.vector_store %arg12[%c0_79, %c0_80], %125 {strides = array<i32>} : memref<64x16xf32, #tpu.memory_space<vmem>>, vector<64x16xf32>,
    return
  }
}

</mosaic_0001>

<bundles_post_ra>
// kernel: fvae_decoder_pallas.1
= control target key start
LH: loop header
LB: loop body
LE: loop exit
PB: predicated region body
PF: predicated region fallthrough
CT: control target
= control target key end

     0   :  { %vm269_vm0 = vcmask 261120   ;;  %v3044_v3 = vmov 0   ;;  %v89_v45 = vlaneseq  ;;  %vm868_vm7 = vcmask 130048   ;;  %s3046_s15 = smov 96   ;;  %s3814_s3 = inlined_call_operand.vmem [shape: f32[32,32], index: 3, kind: input, shape index: {}]   ;;  %s3815_s0 = inlined_call_operand.vmem [shape: f32[64,32], index: 0, kind: input, shape index: {}]   ;;  %s3816_s1 = inlined_call_operand.vmem [shape: f32[64,1], index: 1, kind: input, shape index: {}]   ;;  %s3817_s6 = inlined_call_operand.vmem [shape: f32[2,3,32,64], index: 6, kind: input, shape index: {}]   ;;  %s3818_s4 = inlined_call_operand.vmem [shape: f32[1,32], index: 4, kind: input, shape index: {}]   ;;  %s3819_s5 = inlined_call_operand.vmem [shape: f32[2,16,64], index: 5, kind: input, shape index: {}]   ;;  %s3820_s2 = inlined_call_operand.vmem [shape: f32[64,16], index: 2, kind: input, shape index: {}]   ;;  %s3821_s8 = inlined_call_operand.vmem [shape: f32[2,32,64], index: 8, kind: input, shape index: {}]   ;;  %s3822_s7 = inlined_call_operand.vmem [shape: f32[2,1,64], index: 7, kind: input, shape index: {}]   ;;  %s3823_s9 = inlined_call_operand.vmem [shape: f32[2,1,64], index: 9, kind: input, shape index: {}]   ;;  %s3824_s10 = inlined_call_operand.vmem [shape: f32[32,16], index: 10, kind: input, shape index: {}]   ;;  %s3825_s11 = inlined_call_operand.vmem [shape: f32[1,16], index: 11, kind: input, shape index: {}]   ;;  %s3826_s12 = inlined_call_operand.vmem [shape: f32[64,16], index: 12, kind: output, shape index: {}]  }
   0x1   :  { %v258_v0 = vld [vmem:[%s3814_s3] sm:$0xff]  ;;  %v259_v1 = vld [vmem:[%s3814_s3 + $0x8] sm:$0xff]  ;;  %v260_v2 = vld [vmem:[%s3814_s3 + $0x10] sm:$0xff]  ;;  %2946 = vset.pattern.permute.xlu0 %v3044_v3  ;;  %2947 = vset.pattern.permute.xlu1 %v3044_v3 }
   0x2   :  { %v2807_v4 = vpack.c.bf16 %v259_v1, %v258_v0  ;;  %v261_v5 = vld [vmem:[%s3814_s3 + $0x18] sm:$0xff]  ;;  %v250_v6 = vld [vmem:[%s3815_s0] sm:$0xff]  ;;  %v43_v9 = vld [vmem:[%s3816_s1 + $0x10] sm:$0xff]  ;;  %v3236_v56 = vshrl.u32 %v89_v45, 7 }
   0x3   :  { %v2811_v7 = vpack.c.bf16 %v261_v5, %v260_v2  ;;  %2583 = vmatprep.mubr.msk.f32.mxu0 %vm269_vm0, %v250_v6  ;;  %v41_v8 = vld [vmem:[%s3816_s1] sm:$0xff]  ;;  %61 = vperm.xlu1 %2947, %v43_v9   ;;  %v42_v10 = vld [vmem:[%s3816_s1 + $0x8] sm:$0xff]  ;;  %v44_v11 = vld [vmem:[%s3816_s1 + $0x18] sm:$0xff] }
   0x4   :  { %2808 = vmatprep.subr.bf16.mxu0 %v2807_v4  ;;  %51 = vperm.xlu0 %2946, %v41_v8   ;;  %v251_v12 = vld [vmem:[%s3815_s0 + $0x8] sm:$0xff]  ;;  %v252_v13 = vld [vmem:[%s3815_s0 + $0x10] sm:$0xff]  ;;  %v45_v14 = vld [vmem:[%s3816_s1 + $0x20] sm:$0xff]  ;;  %v102_v63 = vand.u32 31, %v3236_v56  ;;  %v94_v2 = vadd.s32 32, %v3236_v56  ;;  %vm415_vm2 = vcmp.lt.s32.totalorder %v3236_v56, 1 }
   0x5   :  { %2810 = vmatpush3.bf16.msra.mxu0 %v2807_v4  ;;  %v46_v15 = vld [vmem:[%s3816_s1 + $0x28] sm:$0xff]  ;;  %v253_v16 = vld [vmem:[%s3815_s0 + $0x18] sm:$0xff]  ;;  %v254_v17 = vld [vmem:[%s3815_s0 + $0x20] sm:$0xff]  ;;  %vm440_vm4 = vcmp.lt.s32.totalorder %v3236_v56, 7 }
   0x6   :  { %2812 = vmatprep.subr.bf16.mxu0 %v2811_v7  ;;  %v2298_v18 = vld [vmem:[%s3817_s6 + $0x20] sm:$0xff]  ;;  %v2299_v19 = vld [vmem:[%s3817_s6 + $0x28] sm:$0xff]  ;;  %v48_v20 = vld [vmem:[%s3816_s1 + $0x38] sm:$0xff]  ;;  %vm194_vm1 = vcmp.ne.s32.totalorder %v102_v63, 0 }
   0x7   :  { %66 = vperm.xlu1 %2947, %v44_v11   ;;  %v2815_v21 = vpack.c.bf16 %v2299_v19, %v2298_v18  ;;  %v47_v22 = vld [vmem:[%s3816_s1 + $0x30] sm:$0xff]  ;;  %v255_v23 = vld [vmem:[%s3815_s0 + $0x28] sm:$0xff]  ;;  %v257_v25 = vld [vmem:[%s3815_s0 + $0x38] sm:$0xff]  ;;  %v130_v11 = vand.u32 31, %v94_v2 }
   0x8   :  { %56 = vperm.xlu0 %2946, %v42_v10   ;;  %v256_v24 = vld [vmem:[%s3815_s0 + $0x30] sm:$0xff]  ;;  %v2301_v27 = vld [vmem:[%s3817_s6 + $0x38] sm:$0xff]  ;;  %v457_v29 = vld [vmem:[%s3817_s6] sm:$0xff] }
   0x9   :  { %2814 = vmatpush3.bf16.msra.mxu0 %v2811_v7  ;;  %2816 = vmatprep.subr.bf16.mxu1 %v2815_v21  ;;  %v2300_v26 = vld [vmem:[%s3817_s6 + $0x30] sm:$0xff]  ;;  %v458_v30 = vld [vmem:[%s3817_s6 + $0x8] sm:$0xff]  ;;  %v2289_v34 = vld [vmem:[%s3818_s4] ss:$0 sm:$0xff]  ;;  %vm198_vm3 = vcmp.ne.s32.totalorder %v130_v11, 0 }
   0xa   :  { %2818 = vmatpush3.bf16.msra.mxu1 %v2815_v21  ;;  %v2819_v28 = vpack.c.bf16 %v2301_v27, %v2300_v26  ;;  %v2823_v31 = vpack.c.bf16 %v458_v30, %v457_v29  ;;  %v459_v40 = vld [vmem:[%s3817_s6 + $0x10] sm:$0xff]  ;;  %v460_v41 = vld [vmem:[%s3817_s6 + $0x18] sm:$0xff]  ;;  %v2318_v51 = vld [vmem:[%s3817_s6 + $0x40] sm:$0xff] }
   0xb   :  { %76 = vperm.xlu1 %2947, %v46_v15   ;;  %v2827_v49 = vpack.c.bf16 %v460_v41, %v459_v40  ;;  %v2319_v52 = vld [vmem:[%s3817_s6 + $0x48] sm:$0xff]  ;;  %v2321_v18 = vld [vmem:[%s3817_s6 + $0x58] sm:$0xff]  ;;  %v866_v26 = vld [vmem:[%s3819_s5] sm:$0xff] }
   0xc   :  { %2584 = vmatmul.mubr.msk.f32.vlgmr.msra.gmra.mrb[0].mxu0 %vm269_vm0, %v251_v12  ;;  %71 = vperm.xlu0 %2946, %v45_v14   ;;  %v2831_v61 = vpack.c.bf16 %v2319_v52, %v2318_v51  ;;  %v3045_v14 = vmov 0.0   ;;  %v867_v27 = vld [vmem:[%s3819_s5 + $0x8] sm:$0xff] }
   0xd   :  { %2586 = vmatprep.mubr.msk.f32.mxu0 %vm269_vm0, %v252_v13  ;;  %2820 = vmatprep.subr.bf16.mxu1 %v2819_v28  ;;  %v3272_v15 = vsel %vm194_vm1, 1.0, %v3045_v14  ;;  %v3305_v29 = vsel %vm198_vm3, 1.0, %v3045_v14 }
   0xe   :  { %2822 = vmatpush3.bf16.msra.mxu1 %v2819_v28 }
   0xf   :  { %81 = vperm.xlu1 %2947, %v47_v22   ;;  %2824 = vmatprep.subr.bf16.mxu1 %v2823_v31 }
  0x10   :  { %2587 = vmatmul.mubr.msk.f32.gmra.mrb[2].mxu0 %vm269_vm0, %v253_v16  ;;  %86 = vperm.xlu0 %2946, %v48_v20  }
  0x11   :  { %2589 = vmatprep.mubr.msk.f32.mxu0 %vm269_vm0, %v254_v17  ;;  %v2320_v17 = vld [vmem:[%s3817_s6 + $0x50] sm:$0xff] }
  0x14   :  { %2590 = vmatmul.mubr.msk.f32.gmra.mrb[4].mxu0 %vm269_vm0, %v255_v23 }
  0x15   :  { %2592 = vmatprep.mubr.msk.f32.mxu0 %vm269_vm0, %v256_v24  ;;  %v2835_v24 = vpack.c.bf16 %v2321_v18, %v2320_v17  ;;  %v3371_v18 = vld [vmem:[%s3820_s2] sm:$0xff] }
  0x18   :  { %2593 = vmatmul.mubr.msk.f32.gmra.mrb[6].mxu0 %vm269_vm0, %v257_v25 }
  0x82   :  { %v3200_v33 = vpop.permute.xlu1 %61 }
  0x83   :  { %v3198_v32 = vpop.permute.xlu0 %51 }
  0x86   :  { %v3213_v42 = vpop.permute.xlu1 %66 }
  0x87   :  { %v3205_v38 = vpop.permute.xlu0 %56 }
  0x8a   :  { %v3238_v57 = vpop.permute.xlu1 %76 }
  0x8b   :  { %v3231_v53 = vpop.permute.xlu0 %71 }
  0x8e   :  { %v3259_v8 = vpop.permute.xlu1 %81 }
  0x8f   :  { %v3255_v6 = vpop.permute.xlu0 %86 }
  0xdf   :  { %v2585_v35 = vpop.f32.mrb[0].mxu0 }
  0xe0   :  { %v366_v36 = vadd.f32 %v2585_v35, %v2289_v34  ;;  %v360_v37 = vpop.f32.mrb[1].mxu0 }
  0xe1   :  { %v361_v39 = vadd.f32 %v2289_v34, %v360_v37 }
  0xe2   :  { %v3219_v46 = vmul.f32 %v366_v36, %v3205_v38 }
  0xe3   :  { %v3216_v43 = vmul.f32 %v361_v39, %v3198_v32  ;;  %v2588_v44 = vpop.f32.mrb[2].mxu0  ;;  %v93_v39 = vadd.s32 24, %v3236_v56 }
  0xe4   :  { %v376_v47 = vadd.f32 %v2588_v44, %v2289_v34  ;;  %v370_v48 = vpop.f32.mrb[3].mxu0  ;;  %v408_v16 = vrot.slane %v3219_v46, 7  ;;  %v433_v45 = vrot.slane %v3219_v46, 1 }
  0xe5   :  { %v371_v50 = vadd.f32 %v2289_v34, %v370_v48  ;;  %2603 = vmatprep.mubr.msk.f32.mxu1 %vm269_vm0, %v3216_v43  ;;  %v407_v12 = vrot.slane %v3216_v43, 7  ;;  %v432_v44 = vrot.slane %v3216_v43, 1 }
  0xe6   :  { %2604 = vmatmul.mubr.msk.f32.vlgmr.msra.gmra.mrb[0].mxu1 %vm269_vm0, %v3219_v46  ;;  %v3241_v58 = vmul.f32 %v376_v47, %v3213_v42  ;;  %v123_v47 = vand.u32 31, %v93_v39 }
  0xe7   :  { %v3234_v54 = vmul.f32 %v371_v50, %v3200_v33  ;;  %2826 = vmatpush3.bf16.msra.mxu1 %v2823_v31  ;;  %v2591_v55 = vpop.f32.mrb[4].mxu0  ;;  %v422_v25 = vsel %vm415_vm2, %v407_v12, %v408_v16  ;;  %v2839_v31 = vpack.c.bf16 %v867_v27, %v866_v26  ;;  %v447_v51 = vsel %vm440_vm4, %v432_v44, %v433_v45  ;;  %v1118_v26 = vld [vmem:[%s3821_s8 + $0x8] sm:$0xff]  ;;  %v1119_v27 = vld [vmem:[%s3821_s8 + $0x10] sm:$0xff] }
  0xe8   :  { %v386_v59 = vadd.f32 %v2591_v55, %v2289_v34  ;;  %v380_v60 = vpop.f32.mrb[5].mxu0  ;;  %2828 = vmatprep.subr.bf16.mxu1 %v2827_v49  ;;  %v410_v23 = vrot.slane %v3241_v58, 7  ;;  %v435_v52 = vrot.slane %v3241_v58, 1  ;;  %vm221_vm5 = vcmp.ne.s32.totalorder %v123_v47, 31 }
  0xe9   :  { %v381_v62 = vadd.f32 %v2289_v34, %v380_v60  ;;  %2606 = vmatprep.mubr.msk.f32.mxu1 %vm269_vm0, %v3234_v54  ;;  %v409_v21 = vrot.slane %v3234_v54, 7  ;;  %v434_v48 = vrot.slane %v3234_v54, 1  ;;  %v97_v55 = vadd.s32 56, %v3236_v56  ;;  %v2412_v56 = vld [vmem:[%s3821_s8 + $0x20] sm:$0xff] }
  0xea   :  { %2607 = vmatmul.mubr.msk.f32.gmra.mrb[2].mxu1 %vm269_vm0, %v3241_v58  ;;  %v3253_v3 = vmul.f32 %v386_v59, %v3238_v57  ;;  %v3340_v60 = vsel %vm221_vm5, 1.0, %v3045_v14 }
  0xeb   :  { %v3249_v0 = vmul.f32 %v381_v62, %v3231_v53  ;;  %v2594_v1 = vpop.f32.mrb[6].mxu0  ;;  %2830 = vmatpush3.bf16.msra.mxu1 %v2827_v49  ;;  %v421_v28 = vsel %vm415_vm2, %v408_v16, %v409_v21  ;;  %v446_v59 = vsel %vm440_vm4, %v433_v45, %v434_v48  ;;  %v445_v62 = vsel %vm440_vm4, %v434_v48, %v435_v52 }
  0xec   :  { %v396_v4 = vadd.f32 %v2594_v1, %v2289_v34  ;;  %v390_v5 = vpop.f32.mrb[7].mxu0  ;;  %2832 = vmatprep.subr.bf16.mxu1 %v2831_v61  ;;  %v412_v36 = vrot.slane %v3253_v3, 7  ;;  %v437_v63 = vrot.slane %v3253_v3, 1  ;;  %v151_v1 = vand.u32 31, %v97_v55 }
  0xed   :  { %v391_v7 = vadd.f32 %v2289_v34, %v390_v5  ;;  %2609 = vmatprep.mubr.msk.f32.mxu1 %vm269_vm0, %v3249_v0  ;;  %v411_v19 = vrot.slane %v3249_v0, 7  ;;  %v420_v34 = vsel %vm415_vm2, %v409_v21, %v410_v23  ;;  %v436_v49 = vrot.slane %v3249_v0, 1  ;;  %v3398_v21 = vld [vmem:[%s3820_s2 + $0x20] sm:$0xff] }
  0xee   :  { %v3262_v9 = vmul.f32 %v396_v4, %v3255_v6  ;;  %2610 = vmatmul.mubr.msk.f32.gmra.mrb[4].mxu1 %vm269_vm0, %v3253_v3  ;;  %vm225_vm6 = vcmp.ne.s32.totalorder %v151_v1, 31 }
  0xef   :  { %v3267_v10 = vmul.f32 %v391_v7, %v3259_v8  ;;  %v419_v30 = vsel %vm415_vm2, %v410_v23, %v411_v19  ;;  %v418_v40 = vsel %vm415_vm2, %v411_v19, %v412_v36  ;;  %v443_v7 = vsel %vm440_vm4, %v436_v49, %v437_v63  ;;  %v3384_v19 = vld [vmem:[%s3820_s2 + $0x10] sm:$0xff] }
  0xf0   :  { %v414_v13 = vrot.slane %v3262_v9, 7  ;;  %v428_v35 = vmul.f32 %v3305_v29, %v419_v30  ;;  %v439_v5 = vrot.slane %v3262_v9, 1  ;;  %v3412_v23 = vld [vmem:[%s3820_s2 + $0x30] sm:$0xff]  ;;  %v1120_v30 = vld [vmem:[%s3821_s8 + $0x18] sm:$0xff] }
  0xf1   :  { %2612 = vmatprep.mubr.msk.f32.mxu1 %vm269_vm0, %v3267_v10  ;;  %v413_v37 = vrot.slane %v3267_v10, 7  ;;  %v438_v4 = vrot.slane %v3267_v10, 1 }
  0xf2   :  { %2613 = vmatmul.mubr.msk.f32.gmra.mrb[6].mxu1 %vm269_vm0, %v3262_v9  ;;  %v423_v20 = vsel %vm415_vm2, %v414_v13, %v407_v12  ;;  %v3359_v12 = vsel %vm225_vm6, 1.0, %v3045_v14  ;;  %v3379_v14 = vld [vmem:[%s3820_s2 + $0x8] sm:$0xff] }
  0xf3   :  { %v424_v22 = vmul.f32 %v3272_v15, %v423_v20  ;;  %v417_v41 = vsel %vm415_vm2, %v412_v36, %v413_v37  ;;  %v416_v50 = vsel %vm415_vm2, %v413_v37, %v414_v13  ;;  %v442_v11 = vsel %vm440_vm4, %v437_v63, %v438_v4  ;;  %v3393_v20 = vld [vmem:[%s3820_s2 + $0x18] sm:$0xff] }
  0xf4   :  { %v448_v13 = vsel %vm440_vm4, %v439_v5, %v432_v44  ;;  %v441_v16 = vsel %vm440_vm4, %v438_v4, %v439_v5 }
  0xf5   :  { %2623 = vmatprep.mubr.msk.f32.mxu1 %vm269_vm0, %v424_v22  ;;  %v456_v17 = vmul.f32 %v3359_v12, %v448_v13  ;;  %v3407_v22 = vld [vmem:[%s3820_s2 + $0x28] sm:$0xff] }
  0xf6   :  { %2624 = vmatmul.mubr.msk.f32.vlgmr.msra.gmra.mrb[0].mxu1 %vm269_vm0, %v422_v25  ;;  %v1117_v25 = vld [vmem:[%s3821_s8] sm:$0xff] }
  0xf7   :  { %2834 = vmatpush3.bf16.msra.mxu1 %v2831_v61  ;;  %2626 = vmatprep.mubr.msk.f32.mxu1 %vm269_vm0, %v421_v28  ;;  %v444_v61 = vsel %vm440_vm4, %v435_v52, %v436_v49  ;;  %v2843_v28 = vpack.c.bf16 %v1118_v26, %v1117_v25 }
  0xf8   :  { %2836 = vmatprep.subr.bf16.mxu1 %v2835_v24  ;;  %v452_v2 = vmul.f32 %v3340_v60, %v444_v61 }
  0xf9   :  { %2844 = vmatprep.subr.bf16.mxu0 %v2843_v28 }
  0xfa   :  { %2627 = vmatmul.mubr.msk.f32.gmra.mrb[2].mxu1 %vm269_vm0, %v420_v34  ;;  %2846 = vmatpush3.bf16.msra.mxu0 %v2843_v28  ;;  %v2338_v34 = vld [vmem:[%s3822_s7] ss:$0 sm:$0xff] }
  0xfb   :  { %2629 = vmatprep.mubr.msk.f32.mxu1 %vm269_vm0, %v428_v35  ;;  %2838 = vmatpush3.bf16.msra.mxu1 %v2835_v24  ;;  %v3421_v24 = vld [vmem:[%s3820_s2 + $0x38] sm:$0xff] }
  0xfc   :  { %2840 = vmatprep.subr.bf16.mxu1 %v2839_v31 }
  0xfe   :  { %2630 = vmatmul.mubr.msk.f32.gmra.mrb[4].mxu1 %vm269_vm0, %v418_v40 }
  0xff   :  { %2632 = vmatprep.mubr.msk.f32.mxu1 %vm269_vm0, %v417_v41 }
 0x102   :  { %2633 = vmatmul.mubr.msk.f32.gmra.mrb[6].mxu1 %vm269_vm0, %v416_v50 }
 0x103   :  { %2643 = vmatprep.mubr.msk.f32.mxu1 %vm269_vm0, %v447_v51 }
 0x106   :  { %2644 = vmatmul.mubr.msk.f32.vlgmr.msra.gmra.mrb[0].mxu1 %vm269_vm0, %v446_v59 }
 0x107   :  { %2842 = vmatpush3.bf16.msra.mxu1 %v2839_v31  ;;  %2646 = vmatprep.mubr.msk.f32.mxu1 %vm269_vm0, %v445_v62  ;;  %v2847_v31 = vpack.c.bf16 %v1120_v30, %v1119_v27 }
 0x109   :  { %2848 = vmatprep.subr.bf16.mxu0 %v2847_v31 }
 0x10a   :  { %2647 = vmatmul.mubr.msk.f32.gmra.mrb[2].mxu1 %vm269_vm0, %v452_v2  ;;  %2850 = vmatpush3.bf16.msra.mxu0 %v2847_v31 }
 0x10b   :  { %2649 = vmatprep.mubr.msk.f32.mxu1 %vm269_vm0, %v443_v7 }
 0x10e   :  { %2650 = vmatmul.mubr.msk.f32.gmra.mrb[4].mxu1 %vm269_vm0, %v442_v11 }
 0x10f   :  { %2652 = vmatprep.mubr.msk.f32.mxu1 %vm269_vm0, %v441_v16 }
 0x112   :  { %2653 = vmatmul.mubr.msk.f32.gmra.mrb[6].mxu1 %vm269_vm0, %v456_v17 }
 0x113   :  { %2659 = vmatprep.mubr.msk.f32.mxu1 %vm868_vm7, %v3371_v18 }
 0x116   :  { %2660 = vmatmul.mubr.msk.f32.vlgmr.msra.gmra.mrb[0].mxu1 %vm868_vm7, %v3379_v14 }
 0x117   :  { %2662 = vmatprep.mubr.msk.f32.mxu1 %vm868_vm7, %v3384_v19 }
 0x11a   :  { %2663 = vmatmul.mubr.msk.f32.gmra.mrb[2].mxu1 %vm868_vm7, %v3393_v20 }
 0x11b   :  { %2665 = vmatprep.mubr.msk.f32.mxu1 %vm868_vm7, %v3398_v21 }
 0x11e   :  { %2666 = vmatmul.mubr.msk.f32.gmra.mrb[4].mxu1 %vm868_vm7, %v3407_v22 }
 0x11f   :  { %2668 = vmatprep.mubr.msk.f32.mxu1 %vm868_vm7, %v3412_v23 }
 0x122   :  { %2669 = vmatmul.mubr.msk.f32.gmra.mrb[6].mxu1 %vm868_vm7, %v3421_v24 }
 0x1e9   :  { %v2661_v35 = vpop.f32.mrb[0].mxu1 }
 0x1ea   :  { %v3440_v36 = vadd.f32 %v2661_v35, %v2338_v34  ;;  %v959_v37 = vpop.f32.mrb[1].mxu1 }
 0x1eb   :  { %v3442_v39 = vadd.f32 %v2338_v34, %v959_v37 }
 0x1ec   :  { %v2340_v40 = vmul.f32 -1.442695, %v3440_v36 }
 0x1ed   :  { %v2339_v41 = vmul.f32 -1.442695, %v3442_v39  ;;  %v2664_v44 = vpop.f32.mrb[2].mxu1 }
 0x1ee   :  { %2948 = vpow2.f32 %v2340_v40  ;;  %v3446_v45 = vadd.f32 %v2664_v44, %v2338_v34  ;;  %v969_v47 = vpop.f32.mrb[3].mxu1 }
 0x1ef   :  { %2950 = vpow2.f32 %v2339_v41  ;;  %v3448_v48 = vadd.f32 %v2338_v34, %v969_v47 }
 0x1f0   :  { %v2342_v49 = vmul.f32 -1.442695, %v3446_v45 }
 0x1f1   :  { %v2341_v50 = vmul.f32 -1.442695, %v3448_v48  ;;  %v2667_v51 = vpop.f32.mrb[4].mxu1 }
 0x1f2   :  { %2952 = vpow2.f32 %v2342_v49  ;;  %v3452_v52 = vadd.f32 %v2667_v51, %v2338_v34  ;;  %v979_v55 = vpop.f32.mrb[5].mxu1 }
 0x1f3   :  { %2954 = vpow2.f32 %v2341_v50  ;;  %v1017_v59 = vadd.f32 %v2338_v34, %v979_v55  ;;  %v2360_v55 = vld [vmem:[%s3817_s6 + $0x80] sm:$0xff] }
 0x1f4   :  { %v2344_v61 = vmul.f32 -1.442695, %v3452_v52 }
 0x1f5   :  { %v2343_v62 = vmul.f32 -1.442695, %v1017_v59  ;;  %v2670_v63 = vpop.f32.mrb[6].mxu1 }
 0x1f6   :  { %2956 = vpow2.f32 %v2344_v61  ;;  %v3455_v1 = vadd.f32 %v2670_v63, %v2338_v34  ;;  %v989_v2 = vpop.f32.mrb[7].mxu1  ;;  %v2361_v61 = vld [vmem:[%s3817_s6 + $0x88] sm:$0xff] }
 0x1f7   :  { %2958 = vpow2.f32 %v2343_v62  ;;  %v3457_v4 = vadd.f32 %v2338_v34, %v989_v2  ;;  %v2851_v62 = vpack.c.bf16 %v2361_v61, %v2360_v55  ;;  %v2357_v55 = vld [vmem:[%s3817_s6 + $0x68] sm:$0xff] }
 0x1f8   :  { %v2949_v5 = vpop.eup %2948  ;;  %v2346_v7 = vmul.f32 -1.442695, %v3455_v1 }
 0x1f9   :  { %v2951_v11 = vpop.eup %2950  ;;  %v1054_v13 = vadd.f32 1.0, %v2949_v5  ;;  %v2345_v16 = vmul.f32 -1.442695, %v3457_v4  ;;  %2852 = vmatprep.subr.bf16.mxu0 %v2851_v62 }
 0x1fa   :  { %v1053_v17 = vadd.f32 1.0, %v2951_v11  ;;  %2960 = vpow2.f32 %v2346_v7 }
 0x1fb   :  { %2962 = vrcp.f32 %v1054_v13 }
 0x1fc   :  { %v2953_v25 = vpop.eup %2952  ;;  %2964 = vrcp.f32 %v1053_v17 }
 0x1fd   :  { %v2955_v26 = vpop.eup %2954  ;;  %v1056_v27 = vadd.f32 1.0, %v2953_v25  ;;  %2966 = vpow2.f32 %v2345_v16 }
 0x1fe   :  { %v1055_v28 = vadd.f32 1.0, %v2955_v26 }
 0x1ff   :  { %2968 = vrcp.f32 %v1056_v27 }
 0x200   :  { %v2957_v30 = vpop.eup %2956  ;;  %2970 = vrcp.f32 %v1055_v28 }
 0x201   :  { %v2959_v31 = vpop.eup %2958  ;;  %v1058_v34 = vadd.f32 1.0, %v2957_v30 }
 0x202   :  { %v1057_v35 = vadd.f32 1.0, %v2959_v31 }
 0x203   :  { %2972 = vrcp.f32 %v1058_v34 }
 0x204   :  { %v2961_v37 = vpop.eup %2960  ;;  %2974 = vrcp.f32 %v1057_v35 }
 0x205   :  { %v2963_v40 = vpop.eup %2962  ;;  %v1060_v41 = vadd.f32 1.0, %v2961_v37 }
 0x206   :  { %v2965_v44 = vpop.eup %2964  ;;  %1087 = vrot.lane.b32.xlu1 %v2963_v40, %s3046_s15 }
 0x207   :  { %v2967_v47 = vpop.eup %2966  ;;  %2976 = vrcp.f32 %v1060_v41  ;;  %1085 = vrot.lane.b32.xlu0 %v2965_v44, %s3046_s15 }
 0x208   :  { %v1059_v49 = vadd.f32 1.0, %v2967_v47  ;;  %v2362_v47 = vld [vmem:[%s3817_s6 + $0x90] sm:$0xff] }
 0x209   :  { %v2969_v50 = vpop.eup %2968 }
 0x20a   :  { %v2971_v51 = vpop.eup %2970  ;;  %2978 = vrcp.f32 %v1059_v49  ;;  %1091 = vrot.lane.b32.xlu1 %v2969_v50, %s3046_s15  ;;  %v2363_v49 = vld [vmem:[%s3817_s6 + $0x98] sm:$0xff] }
 0x20b   :  { %1089 = vrot.lane.b32.xlu0 %v2971_v51, %s3046_s15  ;;  %2980 = vtanh.f32 %v3442_v39  ;;  %v2855_v50 = vpack.c.bf16 %v2363_v49, %v2362_v47  ;;  %v2356_v51 = vld [vmem:[%s3817_s6 + $0x60] sm:$0xff] }
 0x20c   :  { %2982 = vtanh.f32 %v3440_v36  ;;  %v2859_v61 = vpack.c.bf16 %v2357_v55, %v2356_v51 }
 0x20d   :  { %v2973_v63 = vpop.eup %2972  ;;  %2984 = vtanh.f32 %v3448_v48 }
 0x20e   :  { %v2975_v2 = vpop.eup %2974  ;;  %1095 = vrot.lane.b32.xlu1 %v2973_v63, %s3046_s15  ;;  %2986 = vtanh.f32 %v3446_v45 }
 0x20f   :  { %1093 = vrot.lane.b32.xlu0 %v2975_v2, %s3046_s15  ;;  %2988 = vtanh.f32 %v1017_v59 }
 0x210   :  { %2990 = vtanh.f32 %v3452_v52 }
 0x211   :  { %v2977_v5 = vpop.eup %2976  ;;  %2992 = vtanh.f32 %v3457_v4 }
 0x212   :  { %1099 = vrot.lane.b32.xlu1 %v2977_v5, %s3046_s15  ;;  %2994 = vtanh.f32 %v3455_v1 }
 0x214   :  { %v2979_v7 = vpop.eup %2978 }
 0x215   :  { %1097 = vrot.lane.b32.xlu0 %v2979_v7, %s3046_s15  ;;  %v2981_v13 = vpop.eup %2980 }
 0x216   :  { %v2983_v17 = vpop.eup %2982 }
 0x217   :  { %v2985_v28 = vpop.eup %2984 }
 0x218   :  { %v2987_v39 = vpop.eup %2986 }
 0x219   :  { %v2989_v59 = vpop.eup %2988 }
 0x21a   :  { %v2991_v31 = vpop.eup %2990 }
 0x21b   :  { %v2993_v37 = vpop.eup %2992 }
 0x21c   :  { %v2995_v40 = vpop.eup %2994 }
 0x278   :  { %v1088_v11 = vpop.permute.xlu1 %1087 }
 0x279   :  { %v1086_v16 = vpop.permute.xlu0 %1085  ;;  %v1110_v26 = vmul.f32 %v2983_v17, %v1088_v11  ;;  %v2358_v17 = vld [vmem:[%s3817_s6 + $0x70] sm:$0xff] }
 0x27a   :  { %v1109_v25 = vmul.f32 %v2981_v13, %v1086_v16 }
 0x27c   :  { %2679 = vmatprep.mubr.msk.f32.mxu0 %vm269_vm0, %v1109_v25  ;;  %v1092_v27 = vpop.permute.xlu1 %1091  ;;  %v2359_v25 = vld [vmem:[%s3817_s6 + $0x78] sm:$0xff] }
 0x27d   :  { %2680 = vmatmul.mubr.msk.f32.vlgmr.msra.gmra.mrb[8].mxu0 %vm269_vm0, %v1110_v26  ;;  %v1090_v36 = vpop.permute.xlu0 %1089  ;;  %v1112_v48 = vmul.f32 %v2987_v39, %v1092_v27  ;;  %v2863_v39 = vpack.c.bf16 %v2359_v25, %v2358_v17 }
 0x27e   :  { %v1111_v45 = vmul.f32 %v2985_v28, %v1090_v36  ;;  %2854 = vmatpush3.bf16.msra.mxu0 %v2851_v62  ;;  %v2347_v62 = vld [vmem:[%s3823_s9] ss:$0 sm:$0xff] }
 0x27f   :  { %2856 = vmatprep.subr.bf16.mxu0 %v2855_v50 }
 0x280   :  { %2682 = vmatprep.mubr.msk.f32.mxu0 %vm269_vm0, %v1111_v45  ;;  %v1096_v52 = vpop.permute.xlu1 %1095 }
 0x281   :  { %2683 = vmatmul.mubr.msk.f32.gmra.mrb[10].mxu0 %vm269_vm0, %v1112_v48  ;;  %v1094_v30 = vpop.permute.xlu0 %1093  ;;  %v1114_v35 = vmul.f32 %v2991_v31, %v1096_v52  ;;  %v2380_v52 = vld [vmem:[%s3817_s6 + $0xa0] sm:$0xff] }
 0x282   :  { %v1113_v34 = vmul.f32 %v2989_v59, %v1094_v30  ;;  %2858 = vmatpush3.bf16.msra.mxu0 %v2855_v50  ;;  %v2381_v59 = vld [vmem:[%s3817_s6 + $0xa8] sm:$0xff] }
 0x283   :  { %2860 = vmatprep.subr.bf16.mxu0 %v2859_v61 }
 0x284   :  { %2685 = vmatprep.mubr.msk.f32.mxu0 %vm269_vm0, %v1113_v34  ;;  %v1100_v4 = vpop.permute.xlu1 %1099 }
 0x285   :  { %2686 = vmatmul.mubr.msk.f32.gmra.mrb[12].mxu0 %vm269_vm0, %v1114_v35  ;;  %v1116_v44 = vmul.f32 %v2995_v40, %v1100_v4  ;;  %v2867_v4 = vpack.c.bf16 %v2381_v59, %v2380_v52 }
 0x287   :  { %v1098_v1 = vpop.permute.xlu0 %1097 }
 0x288   :  { %v1115_v41 = vmul.f32 %v2993_v37, %v1098_v1 }
 0x28a   :  { %2688 = vmatprep.mubr.msk.f32.mxu0 %vm269_vm0, %v1115_v41 }
 0x28b   :  { %2689 = vmatmul.mubr.msk.f32.gmra.mrb[14].mxu0 %vm269_vm0, %v1116_v44 }
 0x350   :  { %v2681_v63 = vpop.f32.mrb[8].mxu0 }
 0x351   :  { %v3505_v2 = vadd.f32 %v2681_v63, %v2347_v62  ;;  %v1218_v5 = vpop.f32.mrb[9].mxu0 }
 0x352   :  { %v3507_v7 = vadd.f32 %v2347_v62, %v1218_v5 }
 0x353   :  { %v1258_v11 = vadd.f32 %v3505_v2, %v3219_v46 }
 0x354   :  { %v1257_v13 = vadd.f32 %v3507_v7, %v3216_v43  ;;  %v2684_v16 = vpop.f32.mrb[10].mxu0 }
 0x355   :  { %v3519_v26 = vadd.f32 %v2684_v16, %v2347_v62  ;;  %v1228_v27 = vpop.f32.mrb[11].mxu0  ;;  %v3527_v46 = vmul.f32 %v1258_v11, %v3205_v38 }
 0x356   :  { %v3522_v28 = vmul.f32 %v1257_v13, %v3198_v32  ;;  %v3524_v36 = vadd.f32 %v2347_v62, %v1228_v27  ;;  %v2392_v27 = vld [vmem:[%s3819_s5 + $0x10] sm:$0xff] }
 0x357   :  { %v1260_v43 = vadd.f32 %v3519_v26, %v3241_v58 }
 0x358   :  { %v1259_v45 = vadd.f32 %v3524_v36, %v3234_v54  ;;  %v2687_v48 = vpop.f32.mrb[12].mxu0  ;;  %2699 = vmatprep.mubr.msk.f32.mxu0 %vm269_vm0, %v3522_v28  ;;  %v1273_v55 = vrot.slane %v3522_v28, 7 }
 0x359   :  { %v3541_v30 = vadd.f32 %v2687_v48, %v2347_v62  ;;  %v1238_v31 = vpop.f32.mrb[13].mxu0  ;;  %2700 = vmatmul.mubr.msk.f32.vlgmr.msra.gmra.mrb[16].mxu0 %vm269_vm0, %v3527_v46  ;;  %v3551_v34 = vmul.f32 %v1260_v43, %v3213_v42  ;;  %v2393_v43 = vld [vmem:[%s3819_s5 + $0x18] sm:$0xff] }
 0x35a   :  { %v3546_v54 = vmul.f32 %v1259_v45, %v3200_v33  ;;  %v3548_v58 = vadd.f32 %v2347_v62, %v1238_v31  ;;  %2862 = vmatpush3.bf16.msra.mxu0 %v2859_v61  ;;  %v2875_v45 = vpack.c.bf16 %v2393_v43, %v2392_v27 }
 0x35b   :  { %v1262_v35 = vadd.f32 %v3541_v30, %v3253_v3  ;;  %2864 = vmatprep.subr.bf16.mxu0 %v2863_v39  ;;  %v1276_v16 = vrot.slane %v3551_v34, 7 }
 0x35c   :  { %v1261_v37 = vadd.f32 %v3548_v58, %v3249_v0  ;;  %2702 = vmatprep.mubr.msk.f32.mxu0 %vm269_vm0, %v3546_v54  ;;  %v1275_v11 = vrot.slane %v3546_v54, 7 }
 0x35d   :  { %2703 = vmatmul.mubr.msk.f32.gmra.mrb[18].mxu0 %vm269_vm0, %v3551_v34  ;;  %v3565_v41 = vmul.f32 %v1262_v35, %v3238_v57 }
 0x35e   :  { %v3562_v1 = vmul.f32 %v1261_v37, %v3231_v53  ;;  %v2690_v40 = vpop.f32.mrb[14].mxu0  ;;  %2866 = vmatpush3.bf16.msra.mxu0 %v2863_v39  ;;  %v1285_v48 = vsel %vm415_vm2, %v1275_v11, %v1276_v16  ;;  %v1298_v37 = vrot.slane %v3527_v46, 1 }
 0x35f   :  { %v3567_v3 = vadd.f32 %v2690_v40, %v2347_v62  ;;  %v1248_v44 = vpop.f32.mrb[15].mxu0  ;;  %2868 = vmatprep.subr.bf16.mxu0 %v2867_v4  ;;  %v1278_v59 = vrot.slane %v3565_v41, 7  ;;  %v1299_v40 = vrot.slane %v3546_v54, 1 }
 0x360   :  { %v3569_v47 = vadd.f32 %v2347_v62, %v1248_v44  ;;  %2705 = vmatprep.mubr.msk.f32.mxu0 %vm269_vm0, %v3562_v1  ;;  %v1274_v62 = vrot.slane %v3527_v46, 7  ;;  %v1277_v63 = vrot.slane %v3562_v1, 7  ;;  %v1301_v44 = vrot.slane %v3562_v1, 1 }
 0x361   :  { %v1264_v0 = vadd.f32 %v3567_v3, %v3262_v9  ;;  %2706 = vmatmul.mubr.msk.f32.gmra.mrb[20].mxu0 %vm269_vm0, %v3565_v41  ;;  %v2382_v9 = vld [vmem:[%s3817_s6 + $0xb0] sm:$0xff]  ;;  %v1302_v1 = vrot.slane %v3565_v41, 1 }
 0x362   :  { %v1263_v49 = vadd.f32 %v3569_v47, %v3267_v10  ;;  %v2383_v10 = vld [vmem:[%s3817_s6 + $0xb8] sm:$0xff]  ;;  %v1287_v25 = vsel %vm415_vm2, %v1273_v55, %v1274_v62  ;;  %v1284_v39 = vsel %vm415_vm2, %v1276_v16, %v1277_v63  ;;  %v1283_v35 = vsel %vm415_vm2, %v1277_v63, %v1278_v59 }
 0x363   :  { %v3580_v50 = vmul.f32 %v1264_v0, %v3255_v6  ;;  %v2871_v17 = vpack.c.bf16 %v2383_v10, %v2382_v9  ;;  %v1293_v52 = vmul.f32 %v3305_v29, %v1284_v39  ;;  %v1297_v29 = vrot.slane %v3522_v28, 1 }
 0x364   :  { %v3583_v51 = vmul.f32 %v1263_v49, %v3259_v8  ;;  %v1310_v28 = vsel %vm440_vm4, %v1298_v37, %v1299_v40  ;;  %v1307_v9 = vsel %vm440_vm4, %v1301_v44, %v1302_v1 }
 0x365   :  { %v1280_v61 = vrot.slane %v3580_v50, 7  ;;  %v1311_v49 = vsel %vm440_vm4, %v1297_v29, %v1298_v37 }
 0x366   :  { %2708 = vmatprep.mubr.msk.f32.mxu0 %vm269_vm0, %v3583_v51  ;;  %v1279_v31 = vrot.slane %v3583_v51, 7 }
 0x367   :  { %2709 = vmatmul.mubr.msk.f32.gmra.mrb[22].mxu0 %vm269_vm0, %v3580_v50  ;;  %v1288_v5 = vsel %vm415_vm2, %v1280_v61, %v1273_v55  ;;  %v1300_v55 = vrot.slane %v3551_v34, 1 }
 0x368   :  { %v1289_v13 = vmul.f32 %v3272_v15, %v1288_v5  ;;  %v1286_v15 = vsel %vm415_vm2, %v1274_v62, %v1275_v11  ;;  %v1281_v0 = vsel %vm415_vm2, %v1279_v31, %v1280_v61  ;;  %v1303_v61 = vrot.slane %v3583_v51, 1 }
 0x369   :  { %v1308_v46 = vsel %vm440_vm4, %v1300_v55, %v1301_v44  ;;  %v1309_v54 = vsel %vm440_vm4, %v1299_v40, %v1300_v55  ;;  %v1304_v62 = vrot.slane %v3580_v50, 1 }
 0x36a   :  { %2719 = vmatprep.mubr.msk.f32.mxu0 %vm269_vm0, %v1289_v13  ;;  %v1316_v34 = vmul.f32 %v3340_v60, %v1308_v46  ;;  %v1306_v10 = vsel %vm440_vm4, %v1302_v1, %v1303_v61 }
 0x36b   :  { %2720 = vmatmul.mubr.msk.f32.vlgmr.msra.gmra.mrb[16].mxu0 %vm269_vm0, %v1287_v25  ;;  %v1312_v41 = vsel %vm440_vm4, %v1304_v62, %v1297_v29  ;;  %v1305_v60 = vsel %vm440_vm4, %v1303_v61, %v1304_v62 }
 0x36c   :  { %2870 = vmatpush3.bf16.msra.mxu0 %v2867_v4  ;;  %2722 = vmatprep.mubr.msk.f32.mxu0 %vm269_vm0, %v1286_v15  ;;  %v1282_v4 = vsel %vm415_vm2, %v1278_v59, %v1279_v31  ;;  %v1320_v50 = vmul.f32 %v3359_v12, %v1312_v41  ;;  %v2413_v12 = vld [vmem:[%s3821_s8 + $0x28] sm:$0xff] }
 0x36d   :  { %2872 = vmatprep.subr.bf16.mxu0 %v2871_v17 }
 0x36f   :  { %2723 = vmatmul.mubr.msk.f32.gmra.mrb[18].mxu0 %vm269_vm0, %v1285_v48 }
 0x370   :  { %2725 = vmatprep.mubr.msk.f32.mxu0 %vm269_vm0, %v1293_v52  ;;  %2874 = vmatpush3.bf16.msra.mxu0 %v2871_v17 }
 0x371   :  { %2876 = vmatprep.subr.bf16.mxu0 %v2875_v45 }
 0x373   :  { %2726 = vmatmul.mubr.msk.f32.gmra.mrb[20].mxu0 %vm269_vm0, %v1283_v35 }
 0x374   :  { %2728 = vmatprep.mubr.msk.f32.mxu0 %vm269_vm0, %v1282_v4 }
 0x377   :  { %2729 = vmatmul.mubr.msk.f32.gmra.mrb[22].mxu0 %vm269_vm0, %v1281_v0 }
 0x378   :  { %2739 = vmatprep.mubr.msk.f32.mxu0 %vm269_vm0, %v1311_v49 }
 0x37b   :  { %2740 = vmatmul.mubr.msk.f32.vlgmr.msra.gmra.mrb[16].mxu0 %vm269_vm0, %v1310_v28 }
 0x37c   :  { %2878 = vmatpush3.bf16.msra.mxu0 %v2875_v45  ;;  %2742 = vmatprep.mubr.msk.f32.mxu0 %vm269_vm0, %v1309_v54 }
 0x37f   :  { %2743 = vmatmul.mubr.msk.f32.gmra.mrb[18].mxu0 %vm269_vm0, %v1316_v34 }
 0x380   :  { %2745 = vmatprep.mubr.msk.f32.mxu0 %vm269_vm0, %v1307_v9 }
 0x383   :  { %2746 = vmatmul.mubr.msk.f32.gmra.mrb[20].mxu0 %vm269_vm0, %v1306_v10 }
 0x384   :  { %2748 = vmatprep.mubr.msk.f32.mxu0 %vm269_vm0, %v1305_v60 }
 0x387   :  { %2749 = vmatmul.mubr.msk.f32.gmra.mrb[22].mxu0 %vm269_vm0, %v1320_v50 }
 0x388   :  { %2755 = vmatprep.mubr.msk.f32.mxu0 %vm868_vm7, %v3371_v18  ;;  %v2414_v18 = vld [vmem:[%s3821_s8 + $0x30] sm:$0xff] }
 0x38b   :  { %2756 = vmatmul.mubr.msk.f32.vlgmr.msra.gmra.mrb[16].mxu0 %vm868_vm7, %v3379_v14  ;;  %v2879_v14 = vpack.c.bf16 %v2413_v12, %v2412_v56 }
 0x38c   :  { %2758 = vmatprep.mubr.msk.f32.mxu0 %vm868_vm7, %v3384_v19  ;;  %v2415_v19 = vld [vmem:[%s3821_s8 + $0x38] sm:$0xff] }
 0x38d   :  { %2880 = vmatprep.subr.bf16.mxu1 %v2879_v14 }
 0x38e   :  { %2882 = vmatpush3.bf16.msra.mxu1 %v2879_v14 }
 0x38f   :  { %2759 = vmatmul.mubr.msk.f32.gmra.mrb[18].mxu0 %vm868_vm7, %v3393_v20  ;;  %v2883_v20 = vpack.c.bf16 %v2415_v19, %v2414_v18 }
 0x390   :  { %2761 = vmatprep.mubr.msk.f32.mxu0 %vm868_vm7, %v3398_v21  ;;  %v2403_v21 = vld [vmem:[%s3822_s7 + $0x1] ss:$0 sm:$0xff] }
 0x391   :  { %2884 = vmatprep.subr.bf16.mxu1 %v2883_v20 }
 0x392   :  { %2886 = vmatpush3.bf16.msra.mxu1 %v2883_v20 }
 0x393   :  { %2762 = vmatmul.mubr.msk.f32.gmra.mrb[20].mxu0 %vm868_vm7, %v3407_v22 }
 0x394   :  { %2764 = vmatprep.mubr.msk.f32.mxu0 %vm868_vm7, %v3412_v23 }
 0x397   :  { %2765 = vmatmul.mubr.msk.f32.gmra.mrb[22].mxu0 %vm868_vm7, %v3421_v24 }
 0x45e   :  { %v2757_v22 = vpop.f32.mrb[16].mxu0 }
 0x45f   :  { %v3700_v23 = vadd.f32 %v2757_v22, %v2403_v21  ;;  %v1800_v24 = vpop.f32.mrb[17].mxu0 }
 0x460   :  { %v3702_v51 = vadd.f32 %v2403_v21, %v1800_v24 }
 0x461   :  { %v2405_v63 = vmul.f32 -1.442695, %v3700_v23 }
 0x462   :  { %v2404_v5 = vmul.f32 -1.442695, %v3702_v51  ;;  %v2760_v11 = vpop.f32.mrb[18].mxu0 }
 0x463   :  { %2996 = vpow2.f32 %v2405_v63  ;;  %v3706_v13 = vadd.f32 %v2760_v11, %v2403_v21  ;;  %v1810_v16 = vpop.f32.mrb[19].mxu0 }
 0x464   :  { %2998 = vpow2.f32 %v2404_v5  ;;  %v1857_v17 = vadd.f32 %v2403_v21, %v1810_v16 }
 0x465   :  { %v2407_v25 = vmul.f32 -1.442695, %v3706_v13 }
 0x466   :  { %v2406_v27 = vmul.f32 -1.442695, %v1857_v17  ;;  %v2763_v43 = vpop.f32.mrb[20].mxu0 }
 0x467   :  { %3000 = vpow2.f32 %v2407_v25  ;;  %v1860_v15 = vadd.f32 %v2763_v43, %v2403_v21  ;;  %v1820_v39 = vpop.f32.mrb[21].mxu0 }
 0x468   :  { %3002 = vpow2.f32 %v2406_v27  ;;  %v1859_v45 = vadd.f32 %v2403_v21, %v1820_v39 }
 0x469   :  { %v2409_v48 = vmul.f32 -1.442695, %v1860_v15 }
 0x46a   :  { %v2408_v52 = vmul.f32 -1.442695, %v1859_v45  ;;  %v2766_v59 = vpop.f32.mrb[22].mxu0 }
 0x46b   :  { %3004 = vpow2.f32 %v2409_v48  ;;  %v3709_v31 = vadd.f32 %v2766_v59, %v2403_v21  ;;  %v1830_v35 = vpop.f32.mrb[23].mxu0 }
 0x46c   :  { %3006 = vpow2.f32 %v2408_v52  ;;  %v1861_v4 = vadd.f32 %v2403_v21, %v1830_v35 }
 0x46d   :  { %v2997_v29 = vpop.eup %2996  ;;  %v2411_v37 = vmul.f32 -1.442695, %v3709_v31 }
 0x46e   :  { %v2999_v40 = vpop.eup %2998  ;;  %v1896_v44 = vadd.f32 1.0, %v2997_v29  ;;  %v2410_v0 = vmul.f32 -1.442695, %v1861_v4 }
 0x46f   :  { %v1895_v49 = vadd.f32 1.0, %v2999_v40  ;;  %3008 = vpow2.f32 %v2411_v37  ;;  %v2117_v40 = vld [vmem:[%s3824_s10] sm:$0xff] }
 0x470   :  { %3010 = vrcp.f32 %v1896_v44  ;;  %v2118_v44 = vld [vmem:[%s3824_s10 + $0x8] sm:$0xff] }
 0x471   :  { %v3001_v55 = vpop.eup %3000  ;;  %3012 = vrcp.f32 %v1895_v49  ;;  %v2887_v49 = vpack.c.bf16 %v2118_v44, %v2117_v40 }
 0x472   :  { %v3003_v28 = vpop.eup %3002  ;;  %v1898_v46 = vadd.f32 1.0, %v3001_v55  ;;  %3014 = vpow2.f32 %v2410_v0  ;;  %v2119_v0 = vld [vmem:[%s3824_s10 + $0x10] sm:$0xff]  ;;  %v2120_v55 = vld [vmem:[%s3824_s10 + $0x18] sm:$0xff] }
 0x473   :  { %v1897_v54 = vadd.f32 1.0, %v3003_v28  ;;  %v2891_v28 = vpack.c.bf16 %v2120_v55, %v2119_v0  ;;  %2888 = vmatprep.subr.bf16.mxu1 %v2887_v49 }
 0x474   :  { %3016 = vrcp.f32 %v1898_v46  ;;  %v2417_v46 = vld [vmem:[%s3823_s9 + $0x1] ss:$0 sm:$0xff] }
 0x475   :  { %v3005_v1 = vpop.eup %3004  ;;  %3018 = vrcp.f32 %v1897_v54 }
 0x476   :  { %v3007_v34 = vpop.eup %3006  ;;  %v1900_v61 = vadd.f32 1.0, %v3005_v1 }
 0x477   :  { %v1899_v62 = vadd.f32 1.0, %v3007_v34 }
 0x478   :  { %3020 = vrcp.f32 %v1900_v61 }
 0x479   :  { %v3009_v9 = vpop.eup %3008  ;;  %3022 = vrcp.f32 %v1899_v62 }
 0x47a   :  { %v3011_v10 = vpop.eup %3010  ;;  %v1902_v41 = vadd.f32 1.0, %v3009_v9 }
 0x47b   :  { %v3013_v60 = vpop.eup %3012  ;;  %1929 = vrot.lane.b32.xlu1 %v3011_v10, %s3046_s15 }
 0x47c   :  { %v3015_v50 = vpop.eup %3014  ;;  %3024 = vrcp.f32 %v1902_v41  ;;  %1927 = vrot.lane.b32.xlu0 %v3013_v60, %s3046_s15 }
 0x47d   :  { %v1901_v56 = vadd.f32 1.0, %v3015_v50 }
 0x47e   :  { %v3017_v12 = vpop.eup %3016 }
 0x47f   :  { %v3019_v18 = vpop.eup %3018  ;;  %3026 = vrcp.f32 %v1901_v56  ;;  %1933 = vrot.lane.b32.xlu1 %v3017_v12, %s3046_s15 }
 0x480   :  { %1931 = vrot.lane.b32.xlu0 %v3019_v18, %s3046_s15  ;;  %3028 = vtanh.f32 %v3702_v51 }
 0x481   :  { %3030 = vtanh.f32 %v3700_v23 }
 0x482   :  { %v3021_v14 = vpop.eup %3020  ;;  %3032 = vtanh.f32 %v1857_v17 }
 0x483   :  { %v3023_v19 = vpop.eup %3022  ;;  %1937 = vrot.lane.b32.xlu1 %v3021_v14, %s3046_s15  ;;  %3034 = vtanh.f32 %v3706_v13 }
 0x484   :  { %1935 = vrot.lane.b32.xlu0 %v3023_v19, %s3046_s15  ;;  %3036 = vtanh.f32 %v1859_v45 }
 0x485   :  { %3038 = vtanh.f32 %v1860_v15 }
 0x486   :  { %v3025_v20 = vpop.eup %3024  ;;  %3040 = vtanh.f32 %v1861_v4 }
 0x487   :  { %1941 = vrot.lane.b32.xlu1 %v3025_v20, %s3046_s15  ;;  %3042 = vtanh.f32 %v3709_v31 }
 0x489   :  { %v3027_v21 = vpop.eup %3026 }
 0x48a   :  { %1939 = vrot.lane.b32.xlu0 %v3027_v21, %s3046_s15  ;;  %v3029_v24 = vpop.eup %3028 }
 0x48b   :  { %v3031_v5 = vpop.eup %3030 }
 0x48c   :  { %v3033_v27 = vpop.eup %3032 }
 0x48d   :  { %v3035_v23 = vpop.eup %3034 }
 0x48e   :  { %v3037_v15 = vpop.eup %3036 }
 0x48f   :  { %v3039_v45 = vpop.eup %3038 }
 0x490   :  { %v3041_v35 = vpop.eup %3040 }
 0x491   :  { %v3043_v31 = vpop.eup %3042 }
 0x4ed   :  { %v1930_v22 = vpop.permute.xlu1 %1929 }
 0x4ee   :  { %v1928_v63 = vpop.permute.xlu0 %1927  ;;  %v1952_v16 = vmul.f32 %v3031_v5, %v1930_v22 }
 0x4ef   :  { %v1951_v11 = vmul.f32 %v3029_v24, %v1928_v63 }
 0x4f1   :  { %2775 = vmatprep.mubr.msk.f32.mxu1 %vm269_vm0, %v1951_v11  ;;  %v1934_v25 = vpop.permute.xlu1 %1933 }
 0x4f2   :  { %2776 = vmatmul.mubr.msk.f32.vlgmr.msra.gmra.mrb[8].mxu1 %vm269_vm0, %v1952_v16  ;;  %v1932_v51 = vpop.permute.xlu0 %1931  ;;  %v1954_v17 = vmul.f32 %v3035_v23, %v1934_v25 }
 0x4f3   :  { %v1953_v13 = vmul.f32 %v3033_v27, %v1932_v51  ;;  %2890 = vmatpush3.bf16.msra.mxu1 %v2887_v49  ;;  %v2426_v27 = vld [vmem:[%s3825_s11] ss:$0 sm:$0xff] }
 0x4f4   :  { %2892 = vmatprep.subr.bf16.mxu1 %v2891_v28 }
 0x4f5   :  { %2778 = vmatprep.mubr.msk.f32.mxu1 %vm269_vm0, %v1953_v13  ;;  %v1938_v43 = vpop.permute.xlu1 %1937 }
 0x4f6   :  { %2779 = vmatmul.mubr.msk.f32.gmra.mrb[10].mxu1 %vm269_vm0, %v1954_v17  ;;  %v1936_v39 = vpop.permute.xlu0 %1935  ;;  %v1956_v52 = vmul.f32 %v3039_v45, %v1938_v43 }
 0x4f7   :  { %v1955_v48 = vmul.f32 %v3037_v15, %v1936_v39  ;;  %2894 = vmatpush3.bf16.msra.mxu1 %v2891_v28 }
 0x4f9   :  { %2781 = vmatprep.mubr.msk.f32.mxu1 %vm269_vm0, %v1955_v48  ;;  %v1942_v59 = vpop.permute.xlu1 %1941 }
 0x4fa   :  { %2782 = vmatmul.mubr.msk.f32.gmra.mrb[12].mxu1 %vm269_vm0, %v1956_v52  ;;  %v1958_v37 = vmul.f32 %v3043_v31, %v1942_v59 }
 0x4fc   :  { %v1940_v4 = vpop.permute.xlu0 %1939 }
 0x4fd   :  { %v1957_v29 = vmul.f32 %v3041_v35, %v1940_v4 }
 0x4ff   :  { %2784 = vmatprep.mubr.msk.f32.mxu1 %vm269_vm0, %v1957_v29 }
 0x500   :  { %2785 = vmatmul.mubr.msk.f32.gmra.mrb[14].mxu1 %vm269_vm0, %v1958_v37 }
 0x5c5   :  { %v2777_v54 = vpop.f32.mrb[8].mxu1 }
 0x5c6   :  { %v2068_v1 = vadd.f32 %v2777_v54, %v2417_v46  ;;  %v2062_v34 = vpop.f32.mrb[9].mxu1 }
 0x5c7   :  { %v2063_v61 = vadd.f32 %v2417_v46, %v2062_v34 }
 0x5c8   :  { %v2102_v62 = vadd.f32 %v2068_v1, %v3505_v2 }
 0x5c9   :  { %v2101_v9 = vadd.f32 %v2063_v61, %v3507_v7  ;;  %v2780_v10 = vpop.f32.mrb[10].mxu1 }
 0x5ca   :  { %v2078_v41 = vadd.f32 %v2780_v10, %v2417_v46  ;;  %v2072_v60 = vpop.f32.mrb[11].mxu1  ;;  %v2110_v50 = vmul.f32 %v2102_v62, %v3205_v38 }
 0x5cb   :  { %v2073_v56 = vadd.f32 %v2417_v46, %v2072_v60  ;;  %v2109_v12 = vmul.f32 %v2101_v9, %v3198_v32 }
 0x5cc   :  { %v2104_v18 = vadd.f32 %v2078_v41, %v3519_v26  ;;  %2138 = vrot.lane.b32.xlu1 %v2110_v50, %s3046_s15 }
 0x5cd   :  { %v2103_v14 = vadd.f32 %v2073_v56, %v3524_v36  ;;  %v2783_v19 = vpop.f32.mrb[12].mxu1  ;;  %2136 = vrot.lane.b32.xlu0 %v2109_v12, %s3046_s15 }
 0x5ce   :  { %v2088_v2 = vadd.f32 %v2783_v19, %v2417_v46  ;;  %v2082_v20 = vpop.f32.mrb[13].mxu1  ;;  %v2112_v7 = vmul.f32 %v2104_v18, %v3213_v42 }
 0x5cf   :  { %v2083_v21 = vadd.f32 %v2417_v46, %v2082_v20  ;;  %v2111_v22 = vmul.f32 %v2103_v14, %v3200_v33 }
 0x5d0   :  { %v2106_v38 = vadd.f32 %v2088_v2, %v3541_v30  ;;  %2142 = vrot.lane.b32.xlu1 %v2112_v7, %s3046_s15 }
 0x5d1   :  { %v2105_v32 = vadd.f32 %v2083_v21, %v3548_v58  ;;  %2140 = vrot.lane.b32.xlu0 %v2111_v22, %s3046_s15 }
 0x5d2   :  { %v2114_v26 = vmul.f32 %v2106_v38, %v3238_v57 }
 0x5d3   :  { %v2786_v36 = vpop.f32.mrb[14].mxu1  ;;  %v2113_v24 = vmul.f32 %v2105_v32, %v3231_v53 }
 0x5d4   :  { %v2098_v63 = vadd.f32 %v2786_v36, %v2417_v46  ;;  %v2092_v5 = vpop.f32.mrb[15].mxu1  ;;  %2146 = vrot.lane.b32.xlu1 %v2114_v26, %s3046_s15 }
 0x5d5   :  { %v2093_v42 = vadd.f32 %v2417_v46, %v2092_v5  ;;  %2144 = vrot.lane.b32.xlu0 %v2113_v24, %s3046_s15 }
 0x5d6   :  { %v2108_v33 = vadd.f32 %v2098_v63, %v3567_v3 }
 0x5d7   :  { %v2107_v30 = vadd.f32 %v2093_v42, %v3569_v47 }
 0x5d8   :  { %v2116_v58 = vmul.f32 %v2108_v33, %v3255_v6 }
 0x5d9   :  { %v2115_v11 = vmul.f32 %v2107_v30, %v3259_v8 }
 0x5da   :  { %2150 = vrot.lane.b32.xlu1 %v2116_v58, %s3046_s15 }
 0x5db   :  { %2148 = vrot.lane.b32.xlu0 %v2115_v11, %s3046_s15 }
 0x63e   :  { %v2139_v53 = vpop.permute.xlu1 %2138 }
 0x63f   :  { %v2137_v57 = vpop.permute.xlu0 %2136 }
 0x640   :  { %2795 = vmatprep.mubr.msk.f32.mxu1 %vm269_vm0, %v2137_v57 }
 0x641   :  { %2796 = vmatmul.mubr.msk.f32.vlgmr.msra.gmra.mrb[16].mxu1 %vm269_vm0, %v2139_v53 }
 0x642   :  { %v2143_v16 = vpop.permute.xlu1 %2142 }
 0x643   :  { %v2141_v25 = vpop.permute.xlu0 %2140 }
 0x644   :  { %2798 = vmatprep.mubr.msk.f32.mxu1 %vm269_vm0, %v2141_v25 }
 0x645   :  { %2799 = vmatmul.mubr.msk.f32.gmra.mrb[18].mxu1 %vm269_vm0, %v2143_v16 }
 0x646   :  { %v2147_v6 = vpop.permute.xlu1 %2146 }
 0x647   :  { %v2145_v3 = vpop.permute.xlu0 %2144 }
 0x648   :  { %2801 = vmatprep.mubr.msk.f32.mxu1 %vm269_vm0, %v2145_v3 }
 0x649   :  { %2802 = vmatmul.mubr.msk.f32.gmra.mrb[20].mxu1 %vm269_vm0, %v2147_v6 }
 0x64c   :  { %v2151_v47 = vpop.permute.xlu1 %2150 }
 0x64d   :  { %v2149_v8 = vpop.permute.xlu0 %2148 }
 0x64e   :  { %2804 = vmatprep.mubr.msk.f32.mxu1 %vm269_vm0, %v2149_v8 }
 0x64f   :  { %2805 = vmatmul.mubr.msk.f32.gmra.mrb[22].mxu1 %vm269_vm0, %v2151_v47 }
 0x714   :  { %v2797_v51 = vpop.f32.mrb[16].mxu1 }
 0x715   :  { %v2240_v23 = vadd.f32 %v2797_v51, %v2426_v27  ;;  %v2234_v13 = vpop.f32.mrb[17].mxu1 }
 0x716   :  { %v2235_v17 = vadd.f32 %v2426_v27, %v2234_v13 }
 0x717   :  { %2274 = vst.msk [vmem:[%s3826_s12 + $0x8] sm:$0xff] %vm868_vm7, %v2240_v23 }
 0x718   :  { %2273 = vst.msk [vmem:[%s3826_s12] sm:$0xff] %vm868_vm7, %v2235_v17  ;;  %v2800_v43 = vpop.f32.mrb[18].mxu1 }
 0x719   :  { %v2250_v15 = vadd.f32 %v2800_v43, %v2426_v27  ;;  %v2244_v39 = vpop.f32.mrb[19].mxu1 }
 0x71a   :  { %v2245_v45 = vadd.f32 %v2426_v27, %v2244_v39 }
 0x71b   :  { %2276 = vst.msk [vmem:[%s3826_s12 + $0x18] sm:$0xff] %vm868_vm7, %v2250_v15 }
 0x71c   :  { %2275 = vst.msk [vmem:[%s3826_s12 + $0x10] sm:$0xff] %vm868_vm7, %v2245_v45  ;;  %v2803_v48 = vpop.f32.mrb[20].mxu1 }
 0x71d   :  { %v2260_v52 = vadd.f32 %v2803_v48, %v2426_v27  ;;  %v2254_v59 = vpop.f32.mrb[21].mxu1 }
 0x71e   :  { %v2255_v35 = vadd.f32 %v2426_v27, %v2254_v59 }
 0x71f   :  { %2278 = vst.msk [vmem:[%s3826_s12 + $0x28] sm:$0xff] %vm868_vm7, %v2260_v52 }
 0x720   :  { %2277 = vst.msk [vmem:[%s3826_s12 + $0x20] sm:$0xff] %vm868_vm7, %v2255_v35 }
 0x722   :  { %v2806_v4 = vpop.f32.mrb[22].mxu1 }
 0x723   :  { %v2270_v31 = vadd.f32 %v2806_v4, %v2426_v27  ;;  %v2264_v29 = vpop.f32.mrb[23].mxu1 }
 0x724   :  { %v2265_v37 = vadd.f32 %v2426_v27, %v2264_v29 }
 0x725   :  { %2280 = vst.msk [vmem:[%s3826_s12 + $0x38] sm:$0xff] %vm868_vm7, %v2270_v31 }
 0x726   :  { %2279 = vst.msk [vmem:[%s3826_s12 + $0x30] sm:$0xff] %vm868_vm7, %v2265_v37 }

</bundles_post_ra>
